<compile_context>
chip_gen: v6e
topology: v6e:2x2x1
jax: 0.10.0
libtpu: 0.0.40
codegen_flags: <defaults>
</compile_context>

<pallas_src>
import jax
import jax.numpy as jnp
from jax.experimental import pallas as pl
from jax.experimental.pallas import tpu as pltpu

K1_PAD = 896       # 784 padded up to 7*128 (lane-dense K for the fc1 matmul)
H1, H2 = 512, 256
OUT_PAD = 128      # 10 padded up to one full lane group (lane-dense output)
N_CLASSES = 10
MAX_TB = 2048      # batch-tile cap (keeps VMEM ~20 MiB incl. double buffers)


def _round_up(x, m):
    return ((x + m - 1) // m) * m


def _choose_batch_tile(B):
    """Batch tile: multiple of 16 (bf16 sublane packing), capped at MAX_TB.

    For larger batches keep at least 2 grid steps so the "parallel" batch axis
    can shard across both TensorCores on v7x (no-op on v5e/v6e)."""
    if B <= 256:
        return _round_up(B, 16)
    half = _round_up(pl.cdiv(B, 2), 256)
    return min(MAX_TB, half)


def mlp_kernel(x_ref, w1_ref, b1_ref, w2_ref, b2_ref, w3_ref, b3_ref, o_ref):
    # x tile: (TB, 896) bf16, streamed per grid step; weights: bf16, resident;
    # biases f32; all accumulation in f32 on the MXU.
    x = x_ref[...]
    h1 = jnp.dot(x, w1_ref[...], preferred_element_type=jnp.float32) + b1_ref[...]
    h1 = jnp.maximum(h1, 0.0).astype(jnp.bfloat16)
    h2 = jnp.dot(h1, w2_ref[...], preferred_element_type=jnp.float32) + b2_ref[...]
    h2 = jnp.maximum(h2, 0.0).astype(jnp.bfloat16)
    logits = jnp.dot(h2, w3_ref[...], preferred_element_type=jnp.float32) + b3_ref[...]
    o_ref[...] = logits.astype(o_ref.dtype)


def mlp_forward(x, params):
    """x: (B, 1, 28, 28) float32 (NCHW). Returns logits (B, 10) float32."""
    w1, b1, w2, b2, w3, b3 = params  # packed/padded kernel layout (pack_params)
    B = x.shape[0]

    tb = _choose_batch_tile(B)
    padded_b = _round_up(B, tb)
    grid = (padded_b // tb,)

    # x.view(-1, 784), cast to bf16 and pad (batch -> padded_b, K 784 -> 896)
    # in one fused op (run under jit): a single bf16 staging buffer instead of
    # the old padded f32 copy -> ~4x less wrapper-side HBM write traffic.
    x2d = x.reshape(B, 28 * 28).astype(jnp.bfloat16)
    xp = jnp.pad(x2d, ((0, padded_b - B), (0, K1_PAD - 28 * 28)))

    flops = 2 * padded_b * (K1_PAD * H1 + H1 * H2 + H2 * OUT_PAD)
    bytes_accessed = (
        padded_b * K1_PAD * 2                                 # bf16 x in
        + (w1.size + w2.size + w3.size) * 2                   # bf16 weights
        + (b1.size + b2.size + b3.size) * 4                   # f32 biases
        + padded_b * OUT_PAD * 2                              # bf16 logits out
    )

    out = pl.pallas_call(
        mlp_kernel,
        out_shape=jax.ShapeDtypeStruct((padded_b, OUT_PAD), jnp.bfloat16),
        grid=grid,
        in_specs=[
            pl.BlockSpec((tb, K1_PAD), lambda i: (i, 0)),     # x tile (streamed)
            pl.BlockSpec((K1_PAD, H1), lambda i: (0, 0)),     # weights resident
            pl.BlockSpec((1, H1), lambda i: (0, 0)),
            pl.BlockSpec((H1, H2), lambda i: (0, 0)),
            pl.BlockSpec((1, H2), lambda i: (0, 0)),
            pl.BlockSpec((H2, OUT_PAD), lambda i: (0, 0)),
            pl.BlockSpec((1, OUT_PAD), lambda i: (0, 0)),
        ],
        out_specs=pl.BlockSpec((tb, OUT_PAD), lambda i: (i, 0)),
        compiler_params=pltpu.CompilerParams(
            dimension_semantics=("parallel",),
            vmem_limit_bytes=48 * 1024 * 1024,   # <= ~48 MiB: safe on v7x (64 MiB)
        ),
        cost_estimate=pl.CostEstimate(
            flops=flops, transcendentals=0, bytes_accessed=bytes_accessed
        ),
    )(xp, w1, b1, w2, b2, w3, b3)

    # Padded batch rows / padded logit columns are discarded here.
    return out[:B, :N_CLASSES].astype(jnp.float32)


def init_params(key):
    """nn.Linear default init U(-1/sqrt(fan_in), +1/sqrt(fan_in)).

    Logical f32 params; weights stored as (in_features, out_features)."""
    sizes = [(28 * 28, H1), (H1, H2), (H2, N_CLASSES)]
    params = []
    for fan_in, fan_out in sizes:
        key, kw, kb = jax.random.split(key, 3)
        bound = 1.0 / (fan_in ** 0.5)
        w = jax.random.uniform(kw, (fan_in, fan_out), jnp.float32, -bound, bound)
        b = jax.random.uniform(kb, (1, fan_out), jnp.float32, -bound, bound)
        params.extend([w, b])
    return tuple(params)


def pack_params(params):
    """Kernel layout: bf16 weights; fc1 K padded 784->896; fc3 N padded 10->128."""
    w1, b1, w2, b2, w3, b3 = params
    w1p = jnp.zeros((K1_PAD, H1), jnp.float32).at[: 28 * 28, :].set(w1)
    w3p = jnp.zeros((H2, OUT_PAD), jnp.float32).at[:, :N_CLASSES].set(w3)
    b3p = jnp.zeros((1, OUT_PAD), jnp.float32).at[:, :N_CLASSES].set(b3)
    return (
        w1p.astype(jnp.bfloat16),
        b1,
        w2.astype(jnp.bfloat16),
        b2,
        w3p.astype(jnp.bfloat16),
        b3p,
    )


def mlp_reference(x, params_f32):
    """Pure f32 reference matching the PyTorch module semantics."""
    w1, b1, w2, b2, w3, b3 = params_f32
    x2d = x.reshape(x.shape[0], 28 * 28)
    h1 = jnp.maximum(x2d @ w1 + b1, 0.0)
    h2 = jnp.maximum(h1 @ w2 + b2, 0.0)
    return h2 @ w3 + b3


if __name__ == "__main__":
    key = jax.random.PRNGKey(0)
    key, kx = jax.random.split(key)
    params_f32 = init_params(key)
    params = pack_params(params_f32)

    B = 8
    x = jax.random.normal(kx, (B, 1, 28, 28), jnp.float32)  # NCHW, MNIST-shaped

    fwd = jax.jit(mlp_forward)  # fuses the bf16 cast + pad around the kernel
    out = jax.block_until_ready(fwd(x, params))
    ref = mlp_reference(x, params_f32)

    assert out.shape == (B, N_CLASSES)
    # bf16 weights / bf16 x operands / bf16 logit store (f32 accumulation)
    # => relaxed tolerance vs. the pure-f32 reference.
    err = float(jnp.max(jnp.abs(out - ref)))
    assert jnp.allclose(out, ref, atol=8e-2, rtol=8e-2), f"max abs err {err}"

    print("KERNEL_OK")
</pallas_src>

<mosaic_0001>
module attributes {stable_mosaic.version = 11 : i64} {
  func.func @mlp_kernel(%arg0: i32, %arg1: memref<16x896xbf16, #tpu.memory_space<vmem>>, %arg2: memref<896x512xbf16, #tpu.memory_space<vmem>>, %arg3: memref<1x512xf32, #tpu.memory_space<vmem>>, %arg4: memref<512x256xbf16, #tpu.memory_space<vmem>>, %arg5: memref<1x256xf32, #tpu.memory_space<vmem>>, %arg6: memref<256x128xbf16, #tpu.memory_space<vmem>>, %arg7: memref<1x128xf32, #tpu.memory_space<vmem>>, %arg8: memref<16x128xbf16, #tpu.memory_space<vmem>>) attributes {dimension_semantics = [#tpu.dimension_semantics<parallel>], iteration_bounds = array<i64: 1>, scalar_prefetch = 0 : i64, scratch_operands = 0 : i64, tpu.core_type = #tpu.core_type<tc>, window_params = [{transform_indices = @transform_0, window_bounds = array<i64: 16, 896>}, {pipeline_mode = #tpu.pipeline_mode<synchronous>, transform_indices = @transform_1, window_bounds = array<i64: 896, 512>}, {pipeline_mode = #tpu.pipeline_mode<synchronous>, transform_indices = @transform_2, window_bounds = array<i64: 1, 512>}, {pipeline_mode = #tpu.pipeline_mode<synchronous>, transform_indices = @transform_3, window_bounds = array<i64: 512, 256>}, {pipeline_mode = #tpu.pipeline_mode<synchronous>, transform_indices = @transform_4, window_bounds = array<i64: 1, 256>}, {pipeline_mode = #tpu.pipeline_mode<synchronous>, transform_indices = @transform_5, window_bounds = array<i64: 256, 128>}, {pipeline_mode = #tpu.pipeline_mode<synchronous>, transform_indices = @transform_6, window_bounds = array<i64: 1, 128>}, {transform_indices = @transform_7, window_bounds = array<i64: 16, 128>}]} {
    %c0 = arith.constant 0 : index
    %c0_0 = arith.constant 0 : index
    %0 = vector.load %arg1[%c0, %c0_0] : memref<16x896xbf16, #tpu.memory_space<vmem>>, vector<16x896xbf16>
    %c0_1 = arith.constant 0 : index
    %c0_2 = arith.constant 0 : index
    %1 = vector.load %arg2[%c0_1, %c0_2] : memref<896x512xbf16, #tpu.memory_space<vmem>>, vector<896x512xbf16>
    %cst = arith.constant dense<0.000000e+00> : vector<16x512xf32>
    %2 = tpu.matmul %0, %1, %cst {dimension_numbers = #tpu.dot_dimension_numbers<[1], [0], [0], [1], [0, 0, 1, 1], [], []>} : vector<16x896xbf16>, vector<896x512xbf16>, vector<16x512xf32> -> vector<16x512xf32>
    %c0_3 = arith.constant 0 : index
    %c0_4 = arith.constant 0 : index
    %3 = vector.load %arg3[%c0_3, %c0_4] : memref<1x512xf32, #tpu.memory_space<vmem>>, vector<1x512xf32>
    %4 = vector.broadcast %3 : vector<1x512xf32> to vector<16x512xf32>
    %5 = arith.addf %2, %4 : vector<16x512xf32>
    %cst_5 = arith.constant 0.000000e+00 : f32
    %6 = vector.broadcast %cst_5 : f32 to vector<16x512xf32>
    %7 = arith.maximumf %5, %6 : vector<16x512xf32>
    %8 = arith.truncf %7 : vector<16x512xf32> to vector<16x512xbf16>
    %c0_6 = arith.constant 0 : index
    %c0_7 = arith.constant 0 : index
    %9 = vector.load %arg4[%c0_6, %c0_7] : memref<512x256xbf16, #tpu.memory_space<vmem>>, vector<512x256xbf16>
    %cst_8 = arith.constant dense<0.000000e+00> : vector<16x256xf32>
    %10 = tpu.matmul %8, %9, %cst_8 {dimension_numbers = #tpu.dot_dimension_numbers<[1], [0], [0], [1], [0, 0, 1, 1], [], []>} : vector<16x512xbf16>, vector<512x256xbf16>, vector<16x256xf32> -> vector<16x256xf32>
    %c0_9 = arith.constant 0 : index
    %c0_10 = arith.constant 0 : index
    %11 = vector.load %arg5[%c0_9, %c0_10] : memref<1x256xf32, #tpu.memory_space<vmem>>, vector<1x256xf32>
    %12 = vector.broadcast %11 : vector<1x256xf32> to vector<16x256xf32>
    %13 = arith.addf %10, %12 : vector<16x256xf32>
    %cst_11 = arith.constant 0.000000e+00 : f32
    %14 = vector.broadcast %cst_11 : f32 to vector<16x256xf32>
    %15 = arith.maximumf %13, %14 : vector<16x256xf32>
    %16 = arith.truncf %15 : vector<16x256xf32> to vector<16x256xbf16>
    %c0_12 = arith.constant 0 : index
    %c0_13 = arith.constant 0 : index
    %17 = vector.load %arg6[%c0_12, %c0_13] : memref<256x128xbf16, #tpu.memory_space<vmem>>, vector<256x128xbf16>
    %cst_14 = arith.constant dense<0.000000e+00> : vector<16x128xf32>
    %18 = tpu.matmul %16, %17, %cst_14 {dimension_numbers = #tpu.dot_dimension_numbers<[1], [0], [0], [1], [0, 0, 1, 1], [], []>} : vector<16x256xbf16>, vector<256x128xbf16>, vector<16x128xf32> -> vector<16x128xf32>
    %c0_15 = arith.constant 0 : index
    %c0_16 = arith.constant 0 : index
    %19 = vector.load %arg7[%c0_15, %c0_16] : memref<1x128xf32, #tpu.memory_space<vmem>>, vector<1x128xf32>
    %20 = vector.broadcast %19 : vector<1x128xf32> to vector<16x128xf32>
    %21 = arith.addf %18, %20 : vector<16x128xf32>
    %22 = arith.truncf %21 : vector<16x128xf32> to vector<16x128xbf16>
    %c0_17 = arith.constant 0 : index
    %c0_18 = arith.constant 0 : index
    %23 = vector.load %arg8[%c0_17, %c0_18] : memref<16x128xbf16, #tpu.memory_space<vmem>>, vector<16x128xbf16>
    tpu.vector_store %arg8[%c0_17, %c0_18], %22 {strides = array<i32>} : memref<16x128xbf16, #tpu.memory_space<vmem>>, vector<16x128xbf16>,
    return
  }
  func.func @transform_0(%arg0: i32) -> (i32, i32) {
    %c0_i32 = arith.constant 0 : i32
    %c0_i32_0 = arith.constant 0 : i32
    return %arg0, %c0_i32 : i32, i32
  }
  func.func @transform_1(%arg0: i32) -> (i32, i32) {
    %c0_i32 = arith.constant 0 : i32
    %c0_i32_0 = arith.constant 0 : i32
    %c0_i32_1 = arith.constant 0 : i32
    return %c0_i32, %c0_i32_0 : i32, i32
  }
  func.func @transform_2(%arg0: i32) -> (i32, i32) {
    %c0_i32 = arith.constant 0 : i32
    %c0_i32_0 = arith.constant 0 : i32
    %c0_i32_1 = arith.constant 0 : i32
    return %c0_i32, %c0_i32_0 : i32, i32
  }
  func.func @transform_3(%arg0: i32) -> (i32, i32) {
    %c0_i32 = arith.constant 0 : i32
    %c0_i32_0 = arith.constant 0 : i32
    %c0_i32_1 = arith.constant 0 : i32
    return %c0_i32, %c0_i32_0 : i32, i32
  }
  func.func @transform_4(%arg0: i32) -> (i32, i32) {
    %c0_i32 = arith.constant 0 : i32
    %c0_i32_0 = arith.constant 0 : i32
    %c0_i32_1 = arith.constant 0 : i32
    return %c0_i32, %c0_i32_0 : i32, i32
  }
  func.func @transform_5(%arg0: i32) -> (i32, i32) {
    %c0_i32 = arith.constant 0 : i32
    %c0_i32_0 = arith.constant 0 : i32
    %c0_i32_1 = arith.constant 0 : i32
    return %c0_i32, %c0_i32_0 : i32, i32
  }
  func.func @transform_6(%arg0: i32) -> (i32, i32) {
    %c0_i32 = arith.constant 0 : i32
    %c0_i32_0 = arith.constant 0 : i32
    %c0_i32_1 = arith.constant 0 : i32
    return %c0_i32, %c0_i32_0 : i32, i32
  }
  func.func @transform_7(%arg0: i32) -> (i32, i32) {
    %c0_i32 = arith.constant 0 : i32
    %c0_i32_0 = arith.constant 0 : i32
    return %arg0, %c0_i32 : i32, i32
  }
}

</mosaic_0001>

<bundles_post_ra>
// kernel: mlp_forward.1
= control target key start
LH: loop header
LB: loop body
LE: loop exit
PB: predicated region body
PF: predicated region fallthrough
CT: control target
= control target key end

     0   :  { %12 = vsyncpa [#allocation3], 0  ;;  %s3675_s0 = inlined_call_operand.vmem [shape: bf16[16,896], index: 0, kind: input, shape index: {}]   ;;  %s3676_s1 = inlined_call_operand.hbm [shape: bf16[896,512], index: 1, kind: input, shape index: {}]   ;;  %s3677_s2 = inlined_call_operand.vmem [shape: f32[1,512], index: 2, kind: input, shape index: {}]   ;;  %s3678_s3 = inlined_call_operand.vmem [shape: bf16[512,256], index: 3, kind: input, shape index: {}]   ;;  %s3679_s4 = inlined_call_operand.vmem [shape: f32[1,256], index: 4, kind: input, shape index: {}]   ;;  %s3680_s5 = inlined_call_operand.hbm [shape: bf16[256,128], index: 5, kind: input, shape index: {}]   ;;  %s3681_s6 = inlined_call_operand.vmem [shape: f32[1,128], index: 6, kind: input, shape index: {}]   ;;  %s3682_s7 = inlined_call_operand.vmem [shape: bf16[16,128], index: 7, kind: output, shape index: {}]  }
   0x1   :  { %13 = vsyncpa [#allocation5], 0  ;;  %s3354_s24 = smov [#allocation2]  }
   0x2   :  { %s21_s25 = sshll.u32 %s3354_s24, 4  ;;  %s22_s25 = int_to_ptr.vmem [resolvable:$true] %s21_s25 }
   0x3   :  { %s3318_s26 = scalar_lea.vmem %s22_s25, 28672  ;;  %p3323_p1 = scmp.lt.s32.totalorder %s22_s25, %s22_s25 }
   0x4   :  { %p3319_p0 = scmp.ne.s32.totalorder %s22_s25, %s3318_s26  ;;  %p3324_p2 = scmp.lt.s32.totalorder %s3318_s26, %s3318_s26 }
   0x6   :  { %p3325_p3 = por %p3324_p2, %p3323_p1 }
   0x8   :  { %p3326_p4 = pnand %p3325_p3, %p3319_p0 }
   0xa   :  { %3329 = shalt.err (!%p3326_p4)
}
   0xb   :  { %s3355_s27 = smov 256   ;;  %s3356_s28 = smov 16  }
   0xc   :  { %27 = dma.hbm_to_vmem [thread:$0]  %s3676_s1, 28672, %s22_s25, [#allocation3], %s3355_s27, %s3355_s27, %s3356_s28  }
   0xd   :  { %s3357_s8 = smov [#allocation4]  }
   0xe   :  { %s39_s9 = sshll.u32 %s3357_s8, 4  ;;  %s40_s9 = int_to_ptr.vmem [resolvable:$true] %s39_s9 }
   0xf   :  { %s3338_s10 = scalar_lea.vmem %s40_s9, 2048  ;;  %p3343_p6 = scmp.lt.s32.totalorder %s40_s9, %s40_s9 }
  0x10   :  { %p3339_p5 = scmp.ne.s32.totalorder %s40_s9, %s3338_s10  ;;  %p3344_p7 = scmp.lt.s32.totalorder %s3338_s10, %s3338_s10 }
  0x12   :  { %p3345_p8 = por %p3344_p7, %p3343_p6 }
  0x14   :  { %p3346_p9 = pnand %p3345_p8, %p3339_p5 }
  0x16   :  { %3349 = shalt.err (!%p3346_p9)
}
  0x17   :  { %s3358_s11 = smov 64   ;;  %s3359_s12 = smov 4  }
  0x18   :  { %45 = dma.hbm_to_vmem [thread:$0]  %s3680_s5, 2048, %s40_s9, [#allocation5], %s3358_s11, %s3358_s11, %s3359_s12  }
  0x19   :  { %3350 = dma.done.wait [#allocation3], 28672  }
  0x1a   :  { %3351 = vsyncadd [#allocation3], 4294938624 }
  0x1b   :  { %3352 = dma.done.wait [#allocation5], 2048  }
  0x1c   :  { %3353 = vsyncadd [#allocation5], 4294965248  ;;  %v2851_v0 = vld [vmem:[#allocation2 + $0xe4] ss:$16 sps:$4 sm:$0xff]   ;;  %v2855_v2 = vld [vmem:[#allocation2 + $0xe0] ss:$16 sps:$4 sm:$0xff]  }
  0x1d   :  { %v2853_v1 = vld [vmem:[#allocation2 + $0x2e4] ss:$16 sps:$4 sm:$0xff]   ;;  %1465 = vmatprep.subr.bf16.mxu0 %v2851_v0  ;;  %v2856_v3 = vld [vmem:[#allocation2 + $0x2e0] ss:$16 sps:$4 sm:$0xff]   ;;  %v3415_v51 = vld [vmem:[%s3675_s0 + $0xc] ss:$28 sps:$4 sm:$0xff]  }
  0x1e   :  { %1508 = vmatprep.subr.bf16.mxu1 %v2853_v1  ;;  %v2857_v4 = vld [vmem:[#allocation2 + $0xc4] ss:$16 sps:$4 sm:$0xff]   ;;  %1466 = vmatpush1.bf16.msra.mxu0 %v2855_v2  ;;  %v2861_v6 = vld [vmem:[#allocation2 + $0xc0] ss:$16 sps:$4 sm:$0xff]  }
  0x1f   :  { %1509 = vmatpush1.bf16.msra.mxu1 %v2856_v3  ;;  %v2859_v5 = vld [vmem:[#allocation2 + $0x2c4] ss:$16 sps:$4 sm:$0xff]   ;;  %1467 = vmatprep.subr.bf16.mxu0 %v2857_v4  ;;  %v2862_v7 = vld [vmem:[#allocation2 + $0x2c0] ss:$16 sps:$4 sm:$0xff]  }
  0x20   :  { %1510 = vmatprep.subr.bf16.mxu1 %v2859_v5  ;;  %v2863_v8 = vld [vmem:[#allocation2 + $0xa4] ss:$16 sps:$4 sm:$0xff]   ;;  %v2867_v10 = vld [vmem:[#allocation2 + $0xa0] ss:$16 sps:$4 sm:$0xff]   ;;  %1540 = vmatprep.mubr.bf16.mxu1 %v3415_v51 }
  0x21   :  { %v2865_v9 = vld [vmem:[#allocation2 + $0x2a4] ss:$16 sps:$4 sm:$0xff]   ;;  %v2868_v11 = vld [vmem:[#allocation2 + $0x2a0] ss:$16 sps:$4 sm:$0xff]  }
  0x22   :  { %1468 = vmatpush1.bf16.msra.mxu0 %v2861_v6  ;;  %v2869_v12 = vld [vmem:[#allocation2 + $0x84] ss:$16 sps:$4 sm:$0xff]   ;;  %v2873_v14 = vld [vmem:[#allocation2 + $0x80] ss:$16 sps:$4 sm:$0xff]  }
  0x23   :  { %1511 = vmatpush1.bf16.msra.mxu1 %v2862_v7  ;;  %1469 = vmatprep.subr.bf16.mxu0 %v2863_v8  ;;  %v2871_v13 = vld [vmem:[#allocation2 + $0x284] ss:$16 sps:$4 sm:$0xff]   ;;  %v2874_v15 = vld [vmem:[#allocation2 + $0x280] ss:$16 sps:$4 sm:$0xff]  }
  0x24   :  { %1512 = vmatprep.subr.bf16.mxu1 %v2865_v9  ;;  %v2875_v16 = vld [vmem:[#allocation2 + $0x64] ss:$16 sps:$4 sm:$0xff]   ;;  %v2879_v18 = vld [vmem:[#allocation2 + $0x60] ss:$16 sps:$4 sm:$0xff]  }
  0x25   :  { %v2877_v17 = vld [vmem:[#allocation2 + $0x264] ss:$16 sps:$4 sm:$0xff]   ;;  %v2880_v19 = vld [vmem:[#allocation2 + $0x260] ss:$16 sps:$4 sm:$0xff]  }
  0x26   :  { %1470 = vmatpush1.bf16.msra.mxu0 %v2867_v10  ;;  %v2881_v20 = vld [vmem:[#allocation2 + $0x44] ss:$16 sps:$4 sm:$0xff]   ;;  %v2885_v22 = vld [vmem:[#allocation2 + $0x40] ss:$16 sps:$4 sm:$0xff]  }
  0x27   :  { %1513 = vmatpush1.bf16.msra.mxu1 %v2868_v11  ;;  %1471 = vmatprep.subr.bf16.mxu0 %v2869_v12  ;;  %v2883_v21 = vld [vmem:[#allocation2 + $0x244] ss:$16 sps:$4 sm:$0xff]   ;;  %v2886_v23 = vld [vmem:[#allocation2 + $0x240] ss:$16 sps:$4 sm:$0xff]  }
  0x28   :  { %1514 = vmatprep.subr.bf16.mxu1 %v2871_v13  ;;  %v2887_v24 = vld [vmem:[#allocation2 + $0x24] ss:$16 sps:$4 sm:$0xff]   ;;  %v2891_v26 = vld [vmem:[#allocation2 + $0x20] ss:$16 sps:$4 sm:$0xff]  }
  0x29   :  { %v2889_v25 = vld [vmem:[#allocation2 + $0x224] ss:$16 sps:$4 sm:$0xff]   ;;  %v2892_v27 = vld [vmem:[#allocation2 + $0x220] ss:$16 sps:$4 sm:$0xff]  }
  0x2a   :  { %1472 = vmatpush1.bf16.msra.mxu0 %v2873_v14  ;;  %v2893_v28 = vld [vmem:[#allocation2 + $0x4] ss:$16 sps:$4 sm:$0xff]   ;;  %v2897_v30 = vld [vmem:[#allocation2] ss:$16 sps:$4 sm:$0xff]   ;;  %v3360_v14 = vmov 0  }
  0x2b   :  { %1515 = vmatpush1.bf16.msra.mxu1 %v2874_v15  ;;  %1473 = vmatprep.subr.bf16.mxu0 %v2875_v16  ;;  %v2895_v29 = vld [vmem:[#allocation2 + $0x204] ss:$16 sps:$4 sm:$0xff]   ;;  %v2898_v31 = vld [vmem:[#allocation2 + $0x200] ss:$16 sps:$4 sm:$0xff]  }
  0x2c   :  { %1516 = vmatprep.subr.bf16.mxu1 %v2877_v17  ;;  %v2899_v32 = vld [vmem:[#allocation2 + $0x1e4] ss:$16 sps:$4 sm:$0xff]   ;;  %v2903_v34 = vld [vmem:[#allocation2 + $0x1e0] ss:$16 sps:$4 sm:$0xff]  }
  0x2d   :  { %v2901_v33 = vld [vmem:[#allocation2 + $0x3e4] ss:$16 sps:$4 sm:$0xff]   ;;  %v2904_v35 = vld [vmem:[#allocation2 + $0x3e0] ss:$16 sps:$4 sm:$0xff]  }
  0x2e   :  { %1474 = vmatpush1.bf16.msra.mxu0 %v2879_v18  ;;  %v2905_v36 = vld [vmem:[#allocation2 + $0x1c4] ss:$16 sps:$4 sm:$0xff]   ;;  %v2909_v38 = vld [vmem:[#allocation2 + $0x1c0] ss:$16 sps:$4 sm:$0xff]  }
  0x2f   :  { %1517 = vmatpush1.bf16.msra.mxu1 %v2880_v19  ;;  %1475 = vmatprep.subr.bf16.mxu0 %v2881_v20  ;;  %v2907_v37 = vld [vmem:[#allocation2 + $0x3c4] ss:$16 sps:$4 sm:$0xff]   ;;  %v2910_v39 = vld [vmem:[#allocation2 + $0x3c0] ss:$16 sps:$4 sm:$0xff]  }
  0x30   :  { %1518 = vmatprep.subr.bf16.mxu1 %v2883_v21  ;;  %v2911_v40 = vld [vmem:[#allocation2 + $0x1a4] ss:$16 sps:$4 sm:$0xff]   ;;  %v2915_v42 = vld [vmem:[#allocation2 + $0x1a0] ss:$16 sps:$4 sm:$0xff]  }
  0x31   :  { %v2913_v41 = vld [vmem:[#allocation2 + $0x3a4] ss:$16 sps:$4 sm:$0xff]   ;;  %v2916_v43 = vld [vmem:[#allocation2 + $0x3a0] ss:$16 sps:$4 sm:$0xff]  }
  0x32   :  { %1476 = vmatpush1.bf16.msra.mxu0 %v2885_v22  ;;  %v2917_v44 = vld [vmem:[#allocation2 + $0x184] ss:$16 sps:$4 sm:$0xff]   ;;  %v2921_v46 = vld [vmem:[#allocation2 + $0x180] ss:$16 sps:$4 sm:$0xff]  }
  0x33   :  { %1519 = vmatpush1.bf16.msra.mxu1 %v2886_v23  ;;  %1477 = vmatprep.subr.bf16.mxu0 %v2887_v24  ;;  %v2919_v45 = vld [vmem:[#allocation2 + $0x384] ss:$16 sps:$4 sm:$0xff]   ;;  %v2922_v47 = vld [vmem:[#allocation2 + $0x380] ss:$16 sps:$4 sm:$0xff]  }
  0x34   :  { %1520 = vmatprep.subr.bf16.mxu1 %v2889_v25  ;;  %v2923_v48 = vld [vmem:[#allocation2 + $0x164] ss:$16 sps:$4 sm:$0xff]   ;;  %v2927_v52 = vld [vmem:[#allocation2 + $0x160] ss:$16 sps:$4 sm:$0xff]  }
  0x35   :  { %v3410_v49 = vld [vmem:[%s3675_s0 + $0x4] ss:$28 sps:$4 sm:$0xff]  }
  0x36   :  { %1478 = vmatpush1.bf16.msra.mxu0 %v2891_v26  ;;  %v2925_v50 = vld [vmem:[#allocation2 + $0x364] ss:$16 sps:$4 sm:$0xff]   ;;  %1497 = vmatprep.mubr.bf16.mxu0 %v3410_v49  ;;  %v2928_v53 = vld [vmem:[#allocation2 + $0x360] ss:$16 sps:$4 sm:$0xff]  }
  0x37   :  { %1521 = vmatpush1.bf16.msra.mxu1 %v2892_v27  ;;  %1479 = vmatprep.subr.bf16.mxu0 %v2893_v28  ;;  %v2929_v54 = vld [vmem:[#allocation2 + $0x144] ss:$16 sps:$4 sm:$0xff]   ;;  %v2933_v56 = vld [vmem:[#allocation2 + $0x140] ss:$16 sps:$4 sm:$0xff]  }
  0x38   :  { %1522 = vmatprep.subr.bf16.mxu1 %v2895_v29  ;;  %v2931_v55 = vld [vmem:[#allocation2 + $0x344] ss:$16 sps:$4 sm:$0xff]   ;;  %v2934_v57 = vld [vmem:[#allocation2 + $0x340] ss:$16 sps:$4 sm:$0xff]  }
  0x39   :  { %v2935_v58 = vld [vmem:[#allocation2 + $0x124] ss:$16 sps:$4 sm:$0xff]   ;;  %v2939_v60 = vld [vmem:[#allocation2 + $0x120] ss:$16 sps:$4 sm:$0xff]  }
  0x3a   :  { %1480 = vmatpush1.bf16.msra.mxu0 %v2897_v30  ;;  %v2937_v59 = vld [vmem:[#allocation2 + $0x324] ss:$16 sps:$4 sm:$0xff]   ;;  %v2940_v61 = vld [vmem:[#allocation2 + $0x320] ss:$16 sps:$4 sm:$0xff]  }
  0x3b   :  { %1523 = vmatpush1.bf16.msra.mxu1 %v2898_v31  ;;  %1481 = vmatprep.subr.bf16.mxu0 %v2899_v32  ;;  %v2941_v62 = vld [vmem:[#allocation2 + $0x104] ss:$16 sps:$4 sm:$0xff]   ;;  %v2945_v0 = vld [vmem:[#allocation2 + $0x100] ss:$16 sps:$4 sm:$0xff]  }
  0x3c   :  { %1524 = vmatprep.subr.bf16.mxu1 %v2901_v33  ;;  %v2943_v63 = vld [vmem:[#allocation2 + $0x304] ss:$16 sps:$4 sm:$0xff]   ;;  %v2946_v1 = vld [vmem:[#allocation2 + $0x300] ss:$16 sps:$4 sm:$0xff]  }
  0x3d   :  { %v2955_v2 = vld [vmem:[#allocation2 + $0x4e4] ss:$16 sps:$4 sm:$0xff]   ;;  %v3422_v4 = vld [vmem:[%s3675_s0] ss:$28 sps:$4 sm:$0xff]  }
  0x3e   :  { %1482 = vmatpush2.bf16.msra.mxu0 %v2903_v34  ;;  %v2958_v3 = vld [vmem:[#allocation2 + $0x6e4] ss:$16 sps:$4 sm:$0xff]   ;;  %v2953_v6 = vld [vmem:[#allocation2 + $0x4e0] ss:$16 sps:$4 sm:$0xff]  }
  0x3f   :  { %1525 = vmatpush2.bf16.msra.mxu1 %v2904_v35  ;;  %1483 = vmatprep.subr.bf16.mxu0 %v2905_v36  ;;  %v2950_v5 = vld [vmem:[%s3675_s0 + $0x8] ss:$28 sps:$4 sm:$0xff]   ;;  %v2956_v7 = vld [vmem:[#allocation2 + $0x6e0] ss:$16 sps:$4 sm:$0xff]  }
  0x40   :  { %1526 = vmatprep.subr.bf16.mxu1 %v2907_v37  ;;  %v2961_v8 = vld [vmem:[#allocation2 + $0x4c4] ss:$16 sps:$4 sm:$0xff]   ;;  %v2959_v10 = vld [vmem:[#allocation2 + $0x4c0] ss:$16 sps:$4 sm:$0xff]  }
  0x41   :  { %v2964_v9 = vld [vmem:[#allocation2 + $0x6c4] ss:$16 sps:$4 sm:$0xff]   ;;  %v2962_v11 = vld [vmem:[#allocation2 + $0x6c0] ss:$16 sps:$4 sm:$0xff]  }
  0x42   :  { %1484 = vmatpush2.bf16.msra.mxu0 %v2909_v38  ;;  %v2967_v12 = vld [vmem:[#allocation2 + $0x4a4] ss:$16 sps:$4 sm:$0xff]   ;;  %v2965_v15 = vld [vmem:[#allocation2 + $0x4a0] ss:$16 sps:$4 sm:$0xff]  }
  0x43   :  { %1527 = vmatpush2.bf16.msra.mxu1 %v2910_v39  ;;  %1485 = vmatprep.subr.bf16.mxu0 %v2911_v40  ;;  %v2970_v13 = vld [vmem:[#allocation2 + $0x6a4] ss:$16 sps:$4 sm:$0xff]   ;;  %v2968_v16 = vld [vmem:[#allocation2 + $0x6a0] ss:$16 sps:$4 sm:$0xff]   ;;  %v3007_v39 = vld [vmem:[#allocation2 + $0xec] ss:$16 sps:$4 sm:$0xff]  }
  0x44   :  { %1528 = vmatprep.subr.bf16.mxu1 %v2913_v41  ;;  %v2973_v17 = vld [vmem:[#allocation2 + $0x484] ss:$16 sps:$4 sm:$0xff]   ;;  %v2971_v19 = vld [vmem:[#allocation2 + $0x480] ss:$16 sps:$4 sm:$0xff]  }
  0x45   :  { %v2976_v18 = vld [vmem:[#allocation2 + $0x684] ss:$16 sps:$4 sm:$0xff]   ;;  %v2974_v20 = vld [vmem:[#allocation2 + $0x680] ss:$16 sps:$4 sm:$0xff]  }
  0x46   :  { %1486 = vmatpush2.bf16.msra.mxu0 %v2915_v42  ;;  %v2979_v21 = vld [vmem:[#allocation2 + $0x464] ss:$16 sps:$4 sm:$0xff]   ;;  %v2977_v23 = vld [vmem:[#allocation2 + $0x460] ss:$16 sps:$4 sm:$0xff]   ;;  %v3005_v42 = vld [vmem:[#allocation2 + $0xe8] ss:$16 sps:$4 sm:$0xff]  }
  0x47   :  { %1529 = vmatpush2.bf16.msra.mxu1 %v2916_v43  ;;  %1487 = vmatprep.subr.bf16.mxu0 %v2917_v44  ;;  %v2982_v22 = vld [vmem:[#allocation2 + $0x664] ss:$16 sps:$4 sm:$0xff]   ;;  %v2980_v24 = vld [vmem:[#allocation2 + $0x660] ss:$16 sps:$4 sm:$0xff]   ;;  %v3013_v44 = vld [vmem:[#allocation2 + $0xcc] ss:$16 sps:$4 sm:$0xff]  }
  0x48   :  { %1530 = vmatprep.subr.bf16.mxu1 %v2919_v45  ;;  %v2985_v25 = vld [vmem:[#allocation2 + $0x444] ss:$16 sps:$4 sm:$0xff]   ;;  %v2983_v27 = vld [vmem:[#allocation2 + $0x440] ss:$16 sps:$4 sm:$0xff]  }
  0x49   :  { %v2988_v26 = vld [vmem:[#allocation2 + $0x644] ss:$16 sps:$4 sm:$0xff]   ;;  %v2986_v28 = vld [vmem:[#allocation2 + $0x640] ss:$16 sps:$4 sm:$0xff]  }
  0x4a   :  { %1488 = vmatpush2.bf16.msra.mxu0 %v2921_v46  ;;  %v2991_v29 = vld [vmem:[#allocation2 + $0x424] ss:$16 sps:$4 sm:$0xff]   ;;  %v2989_v31 = vld [vmem:[#allocation2 + $0x420] ss:$16 sps:$4 sm:$0xff]   ;;  %v3011_v46 = vld [vmem:[#allocation2 + $0xc8] ss:$16 sps:$4 sm:$0xff]  }
  0x4b   :  { %1531 = vmatpush2.bf16.msra.mxu1 %v2922_v47  ;;  %1489 = vmatprep.subr.bf16.mxu0 %v2923_v48  ;;  %v2994_v30 = vld [vmem:[#allocation2 + $0x624] ss:$16 sps:$4 sm:$0xff]   ;;  %v2992_v32 = vld [vmem:[#allocation2 + $0x620] ss:$16 sps:$4 sm:$0xff]   ;;  %v3019_v48 = vld [vmem:[#allocation2 + $0xac] ss:$16 sps:$4 sm:$0xff]  }
  0x4c   :  { %1532 = vmatprep.subr.bf16.mxu1 %v2925_v50  ;;  %v2997_v33 = vld [vmem:[#allocation2 + $0x404] ss:$16 sps:$4 sm:$0xff]   ;;  %v2995_v36 = vld [vmem:[#allocation2 + $0x400] ss:$16 sps:$4 sm:$0xff]  }
  0x4d   :  { %v3000_v34 = vld [vmem:[#allocation2 + $0x604] ss:$16 sps:$4 sm:$0xff]   ;;  %v2998_v37 = vld [vmem:[#allocation2 + $0x600] ss:$16 sps:$4 sm:$0xff]  }
  0x4e   :  { %1490 = vmatpush2.bf16.msra.mxu0 %v2927_v52  ;;  %v3432_v35 = vld [vmem:[%s3675_s0 + $0x14] ss:$28 sps:$4 sm:$0xff]   ;;  %v3017_v52 = vld [vmem:[#allocation2 + $0xa8] ss:$16 sps:$4 sm:$0xff]  }
  0x4f   :  { %1533 = vmatpush2.bf16.msra.mxu1 %v2928_v53  ;;  %1491 = vmatprep.subr.bf16.mxu0 %v2929_v54  ;;  %v3003_v38 = vld [vmem:[#allocation2 + $0x5e4] ss:$16 sps:$4 sm:$0xff]   ;;  %v3001_v40 = vld [vmem:[#allocation2 + $0x5e0] ss:$16 sps:$4 sm:$0xff]   ;;  %v3025_v54 = vld [vmem:[#allocation2 + $0x8c] ss:$16 sps:$4 sm:$0xff]  }
  0x50   :  { %1534 = vmatprep.subr.bf16.mxu1 %v2931_v55  ;;  %v3438_v41 = vld [vmem:[%s3675_s0 + $0x18] ss:$28 sps:$4 sm:$0xff]   ;;  %v3008_v45 = vld [vmem:[#allocation2 + $0x5c0] ss:$16 sps:$4 sm:$0xff]  }
  0x51   :  { %v3010_v43 = vld [vmem:[#allocation2 + $0x5c4] ss:$16 sps:$4 sm:$0xff]   ;;  %v3014_v50 = vld [vmem:[#allocation2 + $0x5a0] ss:$16 sps:$4 sm:$0xff]  }
  0x52   :  { %1492 = vmatpush2.bf16.msra.mxu0 %v2933_v56  ;;  %v3016_v47 = vld [vmem:[#allocation2 + $0x5a4] ss:$16 sps:$4 sm:$0xff]   ;;  %v3020_v55 = vld [vmem:[#allocation2 + $0x580] ss:$16 sps:$4 sm:$0xff]   ;;  %v3023_v56 = vld [vmem:[#allocation2 + $0x88] ss:$16 sps:$4 sm:$0xff]  }
  0x53   :  { %1535 = vmatpush2.bf16.msra.mxu1 %v2934_v57  ;;  %1493 = vmatprep.subr.bf16.mxu0 %v2935_v58  ;;  %v3022_v53 = vld [vmem:[#allocation2 + $0x584] ss:$16 sps:$4 sm:$0xff]   ;;  %v3031_v58 = vld [vmem:[#allocation2 + $0x6c] ss:$16 sps:$4 sm:$0xff]  }
  0x54   :  { %1536 = vmatprep.subr.bf16.mxu1 %v2937_v59  ;;  %v3028_v57 = vld [vmem:[#allocation2 + $0x564] ss:$16 sps:$4 sm:$0xff]   ;;  %v3026_v59 = vld [vmem:[#allocation2 + $0x560] ss:$16 sps:$4 sm:$0xff]  }
  0x56   :  { %1494 = vmatpush2.bf16.msra.mxu0 %v2939_v60  ;;  %v3034_v60 = vld [vmem:[#allocation2 + $0x544] ss:$16 sps:$4 sm:$0xff]  }
  0x57   :  { %1537 = vmatpush2.bf16.msra.mxu1 %v2940_v61  ;;  %1495 = vmatprep.subr.bf16.mxu0 %v2941_v62  ;;  %v3037_v61 = vld [vmem:[#allocation2 + $0x4c] ss:$16 sps:$4 sm:$0xff]   ;;  %v3032_v62 = vld [vmem:[#allocation2 + $0x540] ss:$16 sps:$4 sm:$0xff]  }
  0x58   :  { %1538 = vmatprep.subr.bf16.mxu1 %v2943_v63  ;;  %v3035_v63 = vld [vmem:[#allocation2 + $0x48] ss:$16 sps:$4 sm:$0xff]  }
  0x5a   :  { %1496 = vmatpush2.bf16.msra.mxu0 %v2945_v0  ;;  %v3040_v0 = vld [vmem:[#allocation2 + $0x524] ss:$16 sps:$4 sm:$0xff]  }
  0x5b   :  { %1539 = vmatpush2.bf16.msra.mxu1 %v2946_v1  ;;  %1551 = vmatprep.subr.bf16.mxu0 %v2955_v2  ;;  %v3043_v1 = vld [vmem:[#allocation2 + $0x2c] ss:$16 sps:$4 sm:$0xff]   ;;  %v3038_v2 = vld [vmem:[#allocation2 + $0x520] ss:$16 sps:$4 sm:$0xff]  }
  0x5c   :  { %1594 = vmatprep.subr.bf16.mxu1 %v2958_v3  ;;  %v3041_v3 = vld [vmem:[#allocation2 + $0x28] ss:$16 sps:$4 sm:$0xff]  }
  0x5d   :  { %1498 = vmatmul.mubr.bf16.vlgmr.msra.gmra.mxu0 %v3422_v4 }
  0x5e   :  { %1541 = vmatmul.mubr.bf16.vlgmr.msra.gmra.mxu1 %v2950_v5  ;;  %1552 = vmatpush1.bf16.msra.mxu0 %v2953_v6  ;;  %v3046_v5 = vld [vmem:[#allocation2 + $0x504] ss:$16 sps:$4 sm:$0xff]   ;;  %v3049_v6 = vld [vmem:[#allocation2 + $0xc] ss:$16 sps:$4 sm:$0xff]  }
  0x5f   :  { %1595 = vmatpush1.bf16.msra.mxu1 %v2956_v7  ;;  %1553 = vmatprep.subr.bf16.mxu0 %v2961_v8  ;;  %v3044_v7 = vld [vmem:[#allocation2 + $0x500] ss:$16 sps:$4 sm:$0xff]   ;;  %v3047_v8 = vld [vmem:[#allocation2 + $0x8] ss:$16 sps:$4 sm:$0xff]  }
  0x60   :  { %1596 = vmatprep.subr.bf16.mxu1 %v2964_v9  ;;  %1626 = vmatprep.mubr.bf16.mxu1 %v3360_v14  ;;  %v3055_v9 = vld [vmem:[#allocation2 + $0x1ec] ss:$16 sps:$4 sm:$0xff]  }
  0x61   :  { %1583 = vmatprep.mubr.bf16.mxu0 %v3432_v35 }
  0x62   :  { %1554 = vmatpush1.bf16.msra.mxu0 %v2959_v10  ;;  %v3058_v10 = vld [vmem:[#allocation2 + $0x2ec] ss:$16 sps:$4 sm:$0xff]  }
  0x63   :  { %1597 = vmatpush1.bf16.msra.mxu1 %v2962_v11  ;;  %1555 = vmatprep.subr.bf16.mxu0 %v2967_v12  ;;  %v3445_v11 = vld [vmem:[%s3675_s0 + $0x10] ss:$28 sps:$4 sm:$0xff]   ;;  %v3053_v12 = vld [vmem:[#allocation2 + $0x1e8] ss:$16 sps:$4 sm:$0xff]  }
  0x64   :  { %1598 = vmatprep.subr.bf16.mxu1 %v2970_v13  ;;  %v3056_v13 = vld [vmem:[#allocation2 + $0x2e8] ss:$16 sps:$4 sm:$0xff]  }
  0x66   :  { %1556 = vmatpush1.bf16.msra.mxu0 %v2965_v15  ;;  %v3061_v15 = vld [vmem:[#allocation2 + $0x1cc] ss:$16 sps:$4 sm:$0xff]  }
  0x67   :  { %1599 = vmatpush1.bf16.msra.mxu1 %v2968_v16  ;;  %1557 = vmatprep.subr.bf16.mxu0 %v2973_v17  ;;  %v3064_v16 = vld [vmem:[#allocation2 + $0x2cc] ss:$16 sps:$4 sm:$0xff]   ;;  %v3059_v17 = vld [vmem:[#allocation2 + $0x1c8] ss:$16 sps:$4 sm:$0xff]  }
  0x68   :  { %1600 = vmatprep.subr.bf16.mxu1 %v2976_v18  ;;  %v3062_v18 = vld [vmem:[#allocation2 + $0x2c8] ss:$16 sps:$4 sm:$0xff]  }
  0x6a   :  { %1558 = vmatpush1.bf16.msra.mxu0 %v2971_v19  ;;  %v3067_v19 = vld [vmem:[#allocation2 + $0x1ac] ss:$16 sps:$4 sm:$0xff]  }
  0x6b   :  { %1601 = vmatpush1.bf16.msra.mxu1 %v2974_v20  ;;  %1559 = vmatprep.subr.bf16.mxu0 %v2979_v21  ;;  %v3070_v20 = vld [vmem:[#allocation2 + $0x2ac] ss:$16 sps:$4 sm:$0xff]   ;;  %v3065_v21 = vld [vmem:[#allocation2 + $0x1a8] ss:$16 sps:$4 sm:$0xff]  }
  0x6c   :  { %1602 = vmatprep.subr.bf16.mxu1 %v2982_v22  ;;  %v3068_v22 = vld [vmem:[#allocation2 + $0x2a8] ss:$16 sps:$4 sm:$0xff]  }
  0x6e   :  { %1560 = vmatpush1.bf16.msra.mxu0 %v2977_v23  ;;  %v3073_v23 = vld [vmem:[#allocation2 + $0x18c] ss:$16 sps:$4 sm:$0xff]  }
  0x6f   :  { %1603 = vmatpush1.bf16.msra.mxu1 %v2980_v24  ;;  %1561 = vmatprep.subr.bf16.mxu0 %v2985_v25  ;;  %v3076_v24 = vld [vmem:[#allocation2 + $0x28c] ss:$16 sps:$4 sm:$0xff]   ;;  %v3071_v25 = vld [vmem:[#allocation2 + $0x188] ss:$16 sps:$4 sm:$0xff]  }
  0x70   :  { %1604 = vmatprep.subr.bf16.mxu1 %v2988_v26  ;;  %v3074_v26 = vld [vmem:[#allocation2 + $0x288] ss:$16 sps:$4 sm:$0xff]  }
  0x72   :  { %1562 = vmatpush1.bf16.msra.mxu0 %v2983_v27  ;;  %v3079_v27 = vld [vmem:[#allocation2 + $0x16c] ss:$16 sps:$4 sm:$0xff]  }
  0x73   :  { %1605 = vmatpush1.bf16.msra.mxu1 %v2986_v28  ;;  %1563 = vmatprep.subr.bf16.mxu0 %v2991_v29  ;;  %v3082_v28 = vld [vmem:[#allocation2 + $0x26c] ss:$16 sps:$4 sm:$0xff]   ;;  %v3077_v29 = vld [vmem:[#allocation2 + $0x168] ss:$16 sps:$4 sm:$0xff]  }
  0x74   :  { %1606 = vmatprep.subr.bf16.mxu1 %v2994_v30  ;;  %v3085_v30 = vld [vmem:[#allocation2 + $0x14c] ss:$16 sps:$4 sm:$0xff]  }
  0x76   :  { %1564 = vmatpush1.bf16.msra.mxu0 %v2989_v31  ;;  %v3088_v31 = vld [vmem:[#allocation2 + $0x24c] ss:$16 sps:$4 sm:$0xff]  }
  0x77   :  { %1607 = vmatpush1.bf16.msra.mxu1 %v2992_v32  ;;  %1565 = vmatprep.subr.bf16.mxu0 %v2997_v33  ;;  %v3083_v32 = vld [vmem:[#allocation2 + $0x148] ss:$16 sps:$4 sm:$0xff]  }
  0x78   :  { %1608 = vmatprep.subr.bf16.mxu1 %v3000_v34  ;;  %v3086_v33 = vld [vmem:[#allocation2 + $0x248] ss:$16 sps:$4 sm:$0xff]   ;;  %v3091_v34 = vld [vmem:[#allocation2 + $0x12c] ss:$16 sps:$4 sm:$0xff]  }
  0x7a   :  { %1566 = vmatpush1.bf16.msra.mxu0 %v2995_v36  ;;  %v3094_v36 = vld [vmem:[#allocation2 + $0x22c] ss:$16 sps:$4 sm:$0xff]  }
  0x7b   :  { %1609 = vmatpush1.bf16.msra.mxu1 %v2998_v37  ;;  %1567 = vmatprep.subr.bf16.mxu0 %v3003_v38  ;;  %v3089_v37 = vld [vmem:[#allocation2 + $0x128] ss:$16 sps:$4 sm:$0xff]  }
  0x7c   :  { %1637 = vmatprep.subr.bf16.mxu1 %v3007_v39  ;;  %v3092_v38 = vld [vmem:[#allocation2 + $0x228] ss:$16 sps:$4 sm:$0xff]   ;;  %v3097_v39 = vld [vmem:[#allocation2 + $0x10c] ss:$16 sps:$4 sm:$0xff]  }
  0x7e   :  { %1627 = vmatmul.mubr.bf16.vlgmr.msra.gmra.mxu1 %v3438_v41  ;;  %1568 = vmatpush2.bf16.msra.mxu0 %v3001_v40  ;;  %v3100_v40 = vld [vmem:[#allocation2 + $0x20c] ss:$16 sps:$4 sm:$0xff]  }
  0x7f   :  { %1638 = vmatpush1.bf16.msra.mxu1 %v3005_v42  ;;  %1569 = vmatprep.subr.bf16.mxu0 %v3010_v43  ;;  %v3095_v42 = vld [vmem:[#allocation2 + $0x108] ss:$16 sps:$4 sm:$0xff]  }
  0x80   :  { %1639 = vmatprep.subr.bf16.mxu1 %v3013_v44  ;;  %1669 = vmatprep.mubr.bf16.mxu1 %v3410_v49  ;;  %v3029_v49 = vld [vmem:[#allocation2 + $0x68] ss:$16 sps:$4 sm:$0xff]   ;;  %v3103_v44 = vld [vmem:[#allocation2 + $0x3ec] ss:$16 sps:$4 sm:$0xff]  }
  0x81   :  { %v3098_v43 = vld [vmem:[#allocation2 + $0x208] ss:$16 sps:$4 sm:$0xff]  }
  0x82   :  { %1570 = vmatpush2.bf16.msra.mxu0 %v3008_v45  ;;  %v3106_v45 = vld [vmem:[#allocation2 + $0x4ec] ss:$16 sps:$4 sm:$0xff]  }
  0x83   :  { %1640 = vmatpush1.bf16.msra.mxu1 %v3011_v46  ;;  %1571 = vmatprep.subr.bf16.mxu0 %v3016_v47  ;;  %v3101_v46 = vld [vmem:[#allocation2 + $0x3e8] ss:$16 sps:$4 sm:$0xff]  }
  0x84   :  { %1641 = vmatprep.subr.bf16.mxu1 %v3019_v48  ;;  %v3104_v47 = vld [vmem:[#allocation2 + $0x4e8] ss:$16 sps:$4 sm:$0xff]   ;;  %v3109_v48 = vld [vmem:[#allocation2 + $0x3cc] ss:$16 sps:$4 sm:$0xff]  }
  0x86   :  { %1572 = vmatpush2.bf16.msra.mxu0 %v3014_v50  ;;  %v3112_v50 = vld [vmem:[#allocation2 + $0x4cc] ss:$16 sps:$4 sm:$0xff]  }
  0x87   :  { %1642 = vmatpush1.bf16.msra.mxu1 %v3017_v52  ;;  %1573 = vmatprep.subr.bf16.mxu0 %v3022_v53  ;;  %v3107_v52 = vld [vmem:[#allocation2 + $0x3c8] ss:$16 sps:$4 sm:$0xff]  }
  0x88   :  { %1643 = vmatprep.subr.bf16.mxu1 %v3025_v54  ;;  %v3110_v53 = vld [vmem:[#allocation2 + $0x4c8] ss:$16 sps:$4 sm:$0xff]   ;;  %v3115_v54 = vld [vmem:[#allocation2 + $0x3ac] ss:$16 sps:$4 sm:$0xff]  }
  0x8a   :  { %1574 = vmatpush2.bf16.msra.mxu0 %v3020_v55  ;;  %v3118_v55 = vld [vmem:[#allocation2 + $0x4ac] ss:$16 sps:$4 sm:$0xff]  }
  0x8b   :  { %1644 = vmatpush1.bf16.msra.mxu1 %v3023_v56  ;;  %1575 = vmatprep.subr.bf16.mxu0 %v3028_v57  ;;  %v3113_v56 = vld [vmem:[#allocation2 + $0x3a8] ss:$16 sps:$4 sm:$0xff]  }
  0x8c   :  { %1645 = vmatprep.subr.bf16.mxu1 %v3031_v58  ;;  %v3116_v57 = vld [vmem:[#allocation2 + $0x4a8] ss:$16 sps:$4 sm:$0xff]   ;;  %v3121_v58 = vld [vmem:[#allocation2 + $0x38c] ss:$16 sps:$4 sm:$0xff]  }
  0x8e   :  { %1576 = vmatpush2.bf16.msra.mxu0 %v3026_v59  ;;  %v3124_v59 = vld [vmem:[#allocation2 + $0x48c] ss:$16 sps:$4 sm:$0xff]  }
  0x8f   :  { %1646 = vmatpush1.bf16.msra.mxu1 %v3029_v49  ;;  %1577 = vmatprep.subr.bf16.mxu0 %v3034_v60  ;;  %v3119_v49 = vld [vmem:[#allocation2 + $0x388] ss:$16 sps:$4 sm:$0xff]   ;;  %v3127_v60 = vld [vmem:[#allocation2 + $0x36c] ss:$16 sps:$4 sm:$0xff]  }
  0x90   :  { %1647 = vmatprep.subr.bf16.mxu1 %v3037_v61  ;;  %v3130_v61 = vld [vmem:[#allocation2 + $0x46c] ss:$16 sps:$4 sm:$0xff]  }
  0x92   :  { %1578 = vmatpush2.bf16.msra.mxu0 %v3032_v62  ;;  %v3125_v62 = vld [vmem:[#allocation2 + $0x368] ss:$16 sps:$4 sm:$0xff]  }
  0x93   :  { %1648 = vmatpush1.bf16.msra.mxu1 %v3035_v63  ;;  %1579 = vmatprep.subr.bf16.mxu0 %v3040_v0  ;;  %v3128_v63 = vld [vmem:[#allocation2 + $0x468] ss:$16 sps:$4 sm:$0xff]   ;;  %v3133_v0 = vld [vmem:[#allocation2 + $0x34c] ss:$16 sps:$4 sm:$0xff]  }
  0x94   :  { %1649 = vmatprep.subr.bf16.mxu1 %v3043_v1  ;;  %v3136_v1 = vld [vmem:[#allocation2 + $0x44c] ss:$16 sps:$4 sm:$0xff]  }
  0x96   :  { %1580 = vmatpush2.bf16.msra.mxu0 %v3038_v2  ;;  %v3134_v2 = vld [vmem:[#allocation2 + $0x448] ss:$16 sps:$4 sm:$0xff]  }
  0x97   :  { %1650 = vmatpush1.bf16.msra.mxu1 %v3041_v3  ;;  %1581 = vmatprep.subr.bf16.mxu0 %v3046_v5  ;;  %v3139_v3 = vld [vmem:[#allocation2 + $0x32c] ss:$16 sps:$4 sm:$0xff]  }
  0x98   :  { %1651 = vmatprep.subr.bf16.mxu1 %v3049_v6  ;;  %v3142_v5 = vld [vmem:[#allocation2 + $0x42c] ss:$16 sps:$4 sm:$0xff]   ;;  %v3137_v6 = vld [vmem:[#allocation2 + $0x328] ss:$16 sps:$4 sm:$0xff]  }
  0x9a   :  { %1582 = vmatpush2.bf16.msra.mxu0 %v3044_v7  ;;  %v3140_v7 = vld [vmem:[#allocation2 + $0x428] ss:$16 sps:$4 sm:$0xff]  }
  0x9b   :  { %1652 = vmatpush1.bf16.msra.mxu1 %v3047_v8  ;;  %1680 = vmatprep.subr.bf16.mxu0 %v3058_v10  ;;  %v3145_v8 = vld [vmem:[#allocation2 + $0x30c] ss:$16 sps:$4 sm:$0xff]   ;;  %v3143_v10 = vld [vmem:[#allocation2 + $0x308] ss:$16 sps:$4 sm:$0xff]  }
  0x9c   :  { %1653 = vmatprep.subr.bf16.mxu1 %v3055_v9  ;;  %v3148_v9 = vld [vmem:[#allocation2 + $0x40c] ss:$16 sps:$4 sm:$0xff]  }
  0x9d   :  { %1584 = vmatmul.mubr.bf16.vlgmr.msra.gmra.mxu0 %v3445_v11 }
  0x9e   :  { %1681 = vmatpush1.bf16.msra.mxu0 %v3056_v13  ;;  %1712 = vmatprep.mubr.bf16.mxu0 %v3415_v51  ;;  %v3080_v51 = vld [vmem:[#allocation2 + $0x268] ss:$16 sps:$4 sm:$0xff]   ;;  %v3151_v13 = vld [vmem:[#allocation2 + $0x5ec] ss:$16 sps:$4 sm:$0xff]  }
  0x9f   :  { %1654 = vmatpush2.bf16.msra.mxu1 %v3053_v12  ;;  %1682 = vmatprep.subr.bf16.mxu0 %v3064_v16  ;;  %v3146_v12 = vld [vmem:[#allocation2 + $0x408] ss:$16 sps:$4 sm:$0xff]  }
  0xa0   :  { %1655 = vmatprep.subr.bf16.mxu1 %v3061_v15  ;;  %v3154_v15 = vld [vmem:[#allocation2 + $0x6ec] ss:$16 sps:$4 sm:$0xff]   ;;  %v3149_v16 = vld [vmem:[#allocation2 + $0x5e8] ss:$16 sps:$4 sm:$0xff]  }
  0xa2   :  { %1683 = vmatpush1.bf16.msra.mxu0 %v3062_v18  ;;  %v3157_v18 = vld [vmem:[#allocation2 + $0x5cc] ss:$16 sps:$4 sm:$0xff]  }
  0xa3   :  { %1656 = vmatpush2.bf16.msra.mxu1 %v3059_v17  ;;  %1684 = vmatprep.subr.bf16.mxu0 %v3070_v20  ;;  %v3152_v17 = vld [vmem:[#allocation2 + $0x6e8] ss:$16 sps:$4 sm:$0xff]  }
  0xa4   :  { %1657 = vmatprep.subr.bf16.mxu1 %v3067_v19  ;;  %v3160_v19 = vld [vmem:[#allocation2 + $0x6cc] ss:$16 sps:$4 sm:$0xff]   ;;  %v3309_v20 = vld [vmem:[%s3675_s0 + $0x8] ss:$28 sps:$4 sm:$0xff]  }
  0xa6   :  { %1685 = vmatpush1.bf16.msra.mxu0 %v3068_v22  ;;  %v3158_v22 = vld [vmem:[#allocation2 + $0x6c8] ss:$16 sps:$4 sm:$0xff]  }
  0xa7   :  { %1658 = vmatpush2.bf16.msra.mxu1 %v3065_v21  ;;  %1686 = vmatprep.subr.bf16.mxu0 %v3076_v24  ;;  %v3155_v21 = vld [vmem:[#allocation2 + $0x5c8] ss:$16 sps:$4 sm:$0xff]   ;;  %v3166_v24 = vld [vmem:[#allocation2 + $0x6ac] ss:$16 sps:$4 sm:$0xff]  }
  0xa8   :  { %1659 = vmatprep.subr.bf16.mxu1 %v3073_v23  ;;  %v3163_v23 = vld [vmem:[#allocation2 + $0x5ac] ss:$16 sps:$4 sm:$0xff]  }
  0xaa   :  { %1687 = vmatpush1.bf16.msra.mxu0 %v3074_v26  ;;  %v3164_v26 = vld [vmem:[#allocation2 + $0x6a8] ss:$16 sps:$4 sm:$0xff]  }
  0xab   :  { %1660 = vmatpush2.bf16.msra.mxu1 %v3071_v25  ;;  %1688 = vmatprep.subr.bf16.mxu0 %v3082_v28  ;;  %v3161_v25 = vld [vmem:[#allocation2 + $0x5a8] ss:$16 sps:$4 sm:$0xff]   ;;  %v3172_v28 = vld [vmem:[#allocation2 + $0x68c] ss:$16 sps:$4 sm:$0xff]  }
  0xac   :  { %1661 = vmatprep.subr.bf16.mxu1 %v3079_v27  ;;  %v3169_v27 = vld [vmem:[#allocation2 + $0x58c] ss:$16 sps:$4 sm:$0xff]  }
  0xae   :  { %1689 = vmatpush1.bf16.msra.mxu0 %v3080_v51  ;;  %v3170_v51 = vld [vmem:[#allocation2 + $0x688] ss:$16 sps:$4 sm:$0xff]  }
  0xaf   :  { %1662 = vmatpush2.bf16.msra.mxu1 %v3077_v29  ;;  %1690 = vmatprep.subr.bf16.mxu0 %v3088_v31  ;;  %v3167_v29 = vld [vmem:[#allocation2 + $0x588] ss:$16 sps:$4 sm:$0xff]   ;;  %v3178_v31 = vld [vmem:[#allocation2 + $0x66c] ss:$16 sps:$4 sm:$0xff]  }
  0xb0   :  { %1663 = vmatprep.subr.bf16.mxu1 %v3085_v30  ;;  %v3175_v30 = vld [vmem:[#allocation2 + $0x56c] ss:$16 sps:$4 sm:$0xff]  }
  0xb2   :  { %1691 = vmatpush1.bf16.msra.mxu0 %v3086_v33  ;;  %v3181_v33 = vld [vmem:[#allocation2 + $0x54c] ss:$16 sps:$4 sm:$0xff]  }
  0xb3   :  { %1664 = vmatpush2.bf16.msra.mxu1 %v3083_v32  ;;  %1692 = vmatprep.subr.bf16.mxu0 %v3094_v36  ;;  %v3173_v32 = vld [vmem:[#allocation2 + $0x568] ss:$16 sps:$4 sm:$0xff]  }
  0xb4   :  { %1665 = vmatprep.subr.bf16.mxu1 %v3091_v34  ;;  %v3184_v34 = vld [vmem:[#allocation2 + $0x64c] ss:$16 sps:$4 sm:$0xff]   ;;  %v3179_v36 = vld [vmem:[#allocation2 + $0x548] ss:$16 sps:$4 sm:$0xff]  }
  0xb6   :  { %1693 = vmatpush1.bf16.msra.mxu0 %v3092_v38  ;;  %v3187_v38 = vld [vmem:[#allocation2 + $0x52c] ss:$16 sps:$4 sm:$0xff]  }
  0xb7   :  { %1666 = vmatpush2.bf16.msra.mxu1 %v3089_v37  ;;  %1694 = vmatprep.subr.bf16.mxu0 %v3100_v40  ;;  %v3182_v37 = vld [vmem:[#allocation2 + $0x648] ss:$16 sps:$4 sm:$0xff]  }
  0xb8   :  { %1667 = vmatprep.subr.bf16.mxu1 %v3097_v39  ;;  %v3190_v39 = vld [vmem:[#allocation2 + $0x62c] ss:$16 sps:$4 sm:$0xff]   ;;  %v3185_v40 = vld [vmem:[#allocation2 + $0x528] ss:$16 sps:$4 sm:$0xff]  }
  0xba   :  { %1695 = vmatpush1.bf16.msra.mxu0 %v3098_v43  ;;  %v3193_v43 = vld [vmem:[#allocation2 + $0x50c] ss:$16 sps:$4 sm:$0xff]  }
  0xbb   :  { %1668 = vmatpush2.bf16.msra.mxu1 %v3095_v42  ;;  %1696 = vmatprep.subr.bf16.mxu0 %v3103_v44  ;;  %v3188_v42 = vld [vmem:[#allocation2 + $0x628] ss:$16 sps:$4 sm:$0xff]   ;;  %v3196_v44 = vld [vmem:[#allocation2 + $0x60c] ss:$16 sps:$4 sm:$0xff]  }
  0xbc   :  { %1723 = vmatprep.subr.bf16.mxu1 %v3106_v45  ;;  %v3191_v45 = vld [vmem:[#allocation2 + $0x508] ss:$16 sps:$4 sm:$0xff]  }
  0xbe   :  { %1670 = vmatmul.mubr.bf16.vlgmr.msra.gmra.mxu1 %v3422_v4  ;;  %1697 = vmatpush2.bf16.msra.mxu0 %v3101_v46  ;;  %v3122_v4 = vld [vmem:[#allocation2 + $0x488] ss:$16 sps:$4 sm:$0xff]  }
  0xbf   :  { %1724 = vmatpush1.bf16.msra.mxu1 %v3104_v47  ;;  %1698 = vmatprep.subr.bf16.mxu0 %v3109_v48  ;;  %v3194_v46 = vld [vmem:[#allocation2 + $0x608] ss:$16 sps:$4 sm:$0xff]   ;;  %v3199_v47 = vld [vmem:[%s3678_s3 + $0x74] ss:$8 sps:$4 sm:$0xff]  }
  0xc0   :  { %1725 = vmatprep.subr.bf16.mxu1 %v3112_v50  ;;  %1755 = vmatprep.mubr.bf16.mxu1 %v3432_v35  ;;  %v3131_v35 = vld [vmem:[#allocation2 + $0x348] ss:$16 sps:$4 sm:$0xff]   ;;  %v3202_v50 = vld [vmem:[%s3678_s3 + $0x64] ss:$8 sps:$4 sm:$0xff]  }
  0xc1   :  { %v3197_v48 = vld [vmem:[%s3678_s3 + $0x70] ss:$8 sps:$4 sm:$0xff]  }
  0xc2   :  { %1699 = vmatpush2.bf16.msra.mxu0 %v3107_v52  ;;  %v3200_v52 = vld [vmem:[%s3678_s3 + $0x60] ss:$8 sps:$4 sm:$0xff]  }
  0xc3   :  { %1726 = vmatpush1.bf16.msra.mxu1 %v3110_v53  ;;  %1700 = vmatprep.subr.bf16.mxu0 %v3115_v54  ;;  %v3205_v53 = vld [vmem:[%s3678_s3 + $0x54] ss:$8 sps:$4 sm:$0xff]   ;;  %v3203_v54 = vld [vmem:[%s3678_s3 + $0x50] ss:$8 sps:$4 sm:$0xff]  }
  0xc4   :  { %1727 = vmatprep.subr.bf16.mxu1 %v3118_v55  ;;  %v3247_v55 = vld [vmem:[%s3678_s3 + $0x174] ss:$8 sps:$4 sm:$0xff]  }
  0xc6   :  { %1701 = vmatpush2.bf16.msra.mxu0 %v3113_v56  ;;  %v3250_v56 = vld [vmem:[%s3678_s3 + $0x164] ss:$8 sps:$4 sm:$0xff]  }
  0xc7   :  { %1728 = vmatpush1.bf16.msra.mxu1 %v3116_v57  ;;  %1702 = vmatprep.subr.bf16.mxu0 %v3121_v58  ;;  %v3206_v57 = vld [vmem:[%s3678_s3 + $0x40] ss:$8 sps:$4 sm:$0xff]   ;;  %v3211_v58 = vld [vmem:[%s3678_s3 + $0x34] ss:$8 sps:$4 sm:$0xff]  }
  0xc8   :  { %1729 = vmatprep.subr.bf16.mxu1 %v3124_v59  ;;  %v3248_v59 = vld [vmem:[%s3678_s3 + $0x160] ss:$8 sps:$4 sm:$0xff]  }
  0xca   :  { %1703 = vmatpush2.bf16.msra.mxu0 %v3119_v49  ;;  %v3253_v49 = vld [vmem:[%s3678_s3 + $0x154] ss:$8 sps:$4 sm:$0xff]  }
  0xcb   :  { %1730 = vmatpush1.bf16.msra.mxu1 %v3122_v4  ;;  %1704 = vmatprep.subr.bf16.mxu0 %v3127_v60  ;;  %v3209_v4 = vld [vmem:[%s3678_s3 + $0x30] ss:$8 sps:$4 sm:$0xff]   ;;  %v3214_v60 = vld [vmem:[%s3678_s3 + $0x24] ss:$8 sps:$4 sm:$0xff]  }
  0xcc   :  { %1731 = vmatprep.subr.bf16.mxu1 %v3130_v61  ;;  %v3251_v61 = vld [vmem:[%s3678_s3 + $0x150] ss:$8 sps:$4 sm:$0xff]  }
  0xce   :  { %1705 = vmatpush2.bf16.msra.mxu0 %v3125_v62  ;;  %v3256_v62 = vld [vmem:[%s3678_s3 + $0x144] ss:$8 sps:$4 sm:$0xff]  }
  0xcf   :  { %1732 = vmatpush1.bf16.msra.mxu1 %v3128_v63  ;;  %1706 = vmatprep.subr.bf16.mxu0 %v3133_v0  ;;  %v3212_v63 = vld [vmem:[%s3678_s3 + $0x20] ss:$8 sps:$4 sm:$0xff]   ;;  %v3217_v0 = vld [vmem:[%s3678_s3 + $0x14] ss:$8 sps:$4 sm:$0xff]  }
  0xd0   :  { %1733 = vmatprep.subr.bf16.mxu1 %v3136_v1  ;;  %v3254_v1 = vld [vmem:[%s3678_s3 + $0x140] ss:$8 sps:$4 sm:$0xff]  }
  0xd2   :  { %1707 = vmatpush2.bf16.msra.mxu0 %v3131_v35  ;;  %v3215_v35 = vld [vmem:[%s3678_s3 + $0x10] ss:$8 sps:$4 sm:$0xff]  }
  0xd3   :  { %1734 = vmatpush1.bf16.msra.mxu1 %v3134_v2  ;;  %1708 = vmatprep.subr.bf16.mxu0 %v3139_v3  ;;  %v3220_v2 = vld [vmem:[%s3678_s3 + $0x4] ss:$8 sps:$4 sm:$0xff]   ;;  %v3218_v3 = vld [vmem:[%s3678_s3] ss:$8 sps:$4 sm:$0xff]  }
  0xd4   :  { %1735 = vmatprep.subr.bf16.mxu1 %v3142_v5  ;;  %v3223_v5 = vld [vmem:[%s3678_s3 + $0xf4] ss:$8 sps:$4 sm:$0xff]  }
  0xd6   :  { %1709 = vmatpush2.bf16.msra.mxu0 %v3137_v6  ;;  %v3221_v6 = vld [vmem:[%s3678_s3 + $0xf0] ss:$8 sps:$4 sm:$0xff]  }
  0xd7   :  { %1736 = vmatpush1.bf16.msra.mxu1 %v3140_v7  ;;  %1710 = vmatprep.subr.bf16.mxu0 %v3145_v8  ;;  %v3226_v7 = vld [vmem:[%s3678_s3 + $0xe4] ss:$8 sps:$4 sm:$0xff]   ;;  %v3259_v8 = vld [vmem:[%s3678_s3 + $0x134] ss:$8 sps:$4 sm:$0xff]  }
  0xd8   :  { %1737 = vmatprep.subr.bf16.mxu1 %v3148_v9  ;;  %v3257_v9 = vld [vmem:[%s3678_s3 + $0x130] ss:$8 sps:$4 sm:$0xff]  }
  0xda   :  { %1711 = vmatpush2.bf16.msra.mxu0 %v3143_v10  ;;  %v3224_v10 = vld [vmem:[%s3678_s3 + $0xe0] ss:$8 sps:$4 sm:$0xff]  }
  0xdb   :  { %1738 = vmatpush1.bf16.msra.mxu1 %v3146_v12  ;;  %1766 = vmatprep.subr.bf16.mxu0 %v3154_v15  ;;  %v3229_v12 = vld [vmem:[%s3678_s3 + $0xd4] ss:$8 sps:$4 sm:$0xff]   ;;  %v3260_v15 = vld [vmem:[%s3678_s3 + $0x120] ss:$8 sps:$4 sm:$0xff]  }
  0xdc   :  { %1739 = vmatprep.subr.bf16.mxu1 %v3151_v13  ;;  %v3262_v13 = vld [vmem:[%s3678_s3 + $0x124] ss:$8 sps:$4 sm:$0xff]  }
  0xdd   :  { %1713 = vmatmul.mubr.bf16.vlgmr.msra.gmra.mxu0 %v3309_v20  ;;  %v3268_v20 = vld [vmem:[%s3678_s3 + $0x104] ss:$8 sps:$4 sm:$0xff]  }
  0xde   :  { %1767 = vmatpush1.bf16.msra.mxu0 %v3152_v17  ;;  %1798 = vmatprep.mubr.bf16.mxu0 %v3360_v14  ;;  %v3176_v14 = vld [vmem:[#allocation2 + $0x668] ss:$16 sps:$4 sm:$0xff]   ;;  %v3232_v17 = vld [vmem:[%s3678_s3 + $0xc4] ss:$8 sps:$4 sm:$0xff]  }
  0xdf   :  { %1740 = vmatpush2.bf16.msra.mxu1 %v3149_v16  ;;  %1768 = vmatprep.subr.bf16.mxu0 %v3160_v19  ;;  %v3227_v16 = vld [vmem:[%s3678_s3 + $0xd0] ss:$8 sps:$4 sm:$0xff]  }
  0xe0   :  { %1741 = vmatprep.subr.bf16.mxu1 %v3157_v18  ;;  %v3265_v18 = vld [vmem:[%s3678_s3 + $0x114] ss:$8 sps:$4 sm:$0xff]   ;;  %v3263_v19 = vld [vmem:[%s3678_s3 + $0x110] ss:$8 sps:$4 sm:$0xff]  }
  0xe2   :  { %1769 = vmatpush1.bf16.msra.mxu0 %v3158_v22  ;;  %v3266_v22 = vld [vmem:[%s3678_s3 + $0x100] ss:$8 sps:$4 sm:$0xff]  }
  0xe3   :  { %1742 = vmatpush2.bf16.msra.mxu1 %v3155_v21  ;;  %1770 = vmatprep.subr.bf16.mxu0 %v3166_v24  ;;  %v3230_v21 = vld [vmem:[%s3678_s3 + $0xc0] ss:$8 sps:$4 sm:$0xff]   ;;  %v3271_v24 = vld [vmem:[%s3678_s3 + $0x1f4] ss:$8 sps:$4 sm:$0xff]  }
  0xe4   :  { %1743 = vmatprep.subr.bf16.mxu1 %v3163_v23  ;;  %v3235_v23 = vld [vmem:[%s3678_s3 + $0xb4] ss:$8 sps:$4 sm:$0xff]  }
  0xe6   :  { %1771 = vmatpush1.bf16.msra.mxu0 %v3164_v26  ;;  %v3269_v26 = vld [vmem:[%s3678_s3 + $0x1f0] ss:$8 sps:$4 sm:$0xff]  }
  0xe7   :  { %1744 = vmatpush2.bf16.msra.mxu1 %v3161_v25  ;;  %1772 = vmatprep.subr.bf16.mxu0 %v3172_v28  ;;  %v3233_v25 = vld [vmem:[%s3678_s3 + $0xb0] ss:$8 sps:$4 sm:$0xff]   ;;  %v3274_v28 = vld [vmem:[%s3678_s3 + $0x1e4] ss:$8 sps:$4 sm:$0xff]  }
  0xe8   :  { %1745 = vmatprep.subr.bf16.mxu1 %v3169_v27  ;;  %v3238_v27 = vld [vmem:[%s3678_s3 + $0xa4] ss:$8 sps:$4 sm:$0xff]  }
  0xea   :  { %1773 = vmatpush1.bf16.msra.mxu0 %v3170_v51  ;;  %v3272_v51 = vld [vmem:[%s3678_s3 + $0x1e0] ss:$8 sps:$4 sm:$0xff]  }
  0xeb   :  { %1746 = vmatpush2.bf16.msra.mxu1 %v3167_v29  ;;  %1774 = vmatprep.subr.bf16.mxu0 %v3178_v31  ;;  %v3236_v29 = vld [vmem:[%s3678_s3 + $0xa0] ss:$8 sps:$4 sm:$0xff]   ;;  %v3277_v31 = vld [vmem:[%s3678_s3 + $0x1d4] ss:$8 sps:$4 sm:$0xff]  }
  0xec   :  { %1747 = vmatprep.subr.bf16.mxu1 %v3175_v30  ;;  %v3241_v30 = vld [vmem:[%s3678_s3 + $0x94] ss:$8 sps:$4 sm:$0xff]  }
  0xee   :  { %1775 = vmatpush1.bf16.msra.mxu0 %v3176_v14  ;;  %v3275_v14 = vld [vmem:[%s3678_s3 + $0x1d0] ss:$8 sps:$4 sm:$0xff]  }
  0xef   :  { %1748 = vmatpush2.bf16.msra.mxu1 %v3173_v32  ;;  %1776 = vmatprep.subr.bf16.mxu0 %v3184_v34  ;;  %v3239_v32 = vld [vmem:[%s3678_s3 + $0x90] ss:$8 sps:$4 sm:$0xff]   ;;  %v3280_v34 = vld [vmem:[%s3678_s3 + $0x1c4] ss:$8 sps:$4 sm:$0xff]  }
  0xf0   :  { %1749 = vmatprep.subr.bf16.mxu1 %v3181_v33  ;;  %v3244_v33 = vld [vmem:[%s3678_s3 + $0x84] ss:$8 sps:$4 sm:$0xff]  }
  0xf2   :  { %1777 = vmatpush1.bf16.msra.mxu0 %v3182_v37  ;;  %v3278_v37 = vld [vmem:[%s3678_s3 + $0x1c0] ss:$8 sps:$4 sm:$0xff]  }
  0xf3   :  { %1750 = vmatpush2.bf16.msra.mxu1 %v3179_v36  ;;  %1778 = vmatprep.subr.bf16.mxu0 %v3190_v39  ;;  %v3242_v36 = vld [vmem:[%s3678_s3 + $0x80] ss:$8 sps:$4 sm:$0xff]   ;;  %v3281_v39 = vld [vmem:[%s3678_s3 + $0x1b0] ss:$8 sps:$4 sm:$0xff]  }
  0xf4   :  { %1751 = vmatprep.subr.bf16.mxu1 %v3187_v38  ;;  %v3283_v38 = vld [vmem:[%s3678_s3 + $0x1b4] ss:$8 sps:$4 sm:$0xff]  }
  0xf6   :  { %1779 = vmatpush1.bf16.msra.mxu0 %v3188_v42  ;;  %v3284_v42 = vld [vmem:[%s3678_s3 + $0x1a0] ss:$8 sps:$4 sm:$0xff]  }
  0xf7   :  { %1752 = vmatpush2.bf16.msra.mxu1 %v3185_v40  ;;  %1780 = vmatprep.subr.bf16.mxu0 %v3196_v44  ;;  %v3286_v40 = vld [vmem:[%s3678_s3 + $0x1a4] ss:$8 sps:$4 sm:$0xff]   ;;  %v3287_v44 = vld [vmem:[%s3678_s3 + $0x190] ss:$8 sps:$4 sm:$0xff]  }
  0xf8   :  { %1753 = vmatprep.subr.bf16.mxu1 %v3193_v43  ;;  %v3289_v43 = vld [vmem:[%s3678_s3 + $0x194] ss:$8 sps:$4 sm:$0xff]  }
  0xfa   :  { %1781 = vmatpush1.bf16.msra.mxu0 %v3194_v46  ;;  %v3290_v46 = vld [vmem:[%s3678_s3 + $0x180] ss:$8 sps:$4 sm:$0xff]  }
  0xfb   :  { %1754 = vmatpush2.bf16.msra.mxu1 %v3191_v45  ;;  %2217 = vmatprep.subr.bf16.mxu0 %v3199_v47  ;;  %v3292_v45 = vld [vmem:[%s3678_s3 + $0x184] ss:$8 sps:$4 sm:$0xff]   ;;  %v289_v47 = vlaneseq }
  0xfc   :  { %2260 = vmatprep.subr.bf16.mxu1 %v3247_v55 }
  0xfd   :  { %1799 = vmatmul.mubr.bf16.vlgmr.msra.gmra.mxu0 %v3438_v41  ;;  %v3208_v41 = vld [vmem:[%s3678_s3 + $0x44] ss:$8 sps:$4 sm:$0xff]  }
  0xfe   :  { %1756 = vmatmul.mubr.bf16.vlgmr.msra.gmra.mxu1 %v3445_v11  ;;  %2218 = vmatpush1.bf16.msra.mxu0 %v3197_v48  ;;  %v3245_v11 = vld [vmem:[%s3678_s3 + $0x170] ss:$8 sps:$4 sm:$0xff]  }
  0xff   :  { %2219 = vmatprep.subr.bf16.mxu0 %v3202_v50  ;;  %2261 = vmatpush1.bf16.msra.mxu1 %v3245_v11  ;;  %v3649_v50 = vshrl.u32 %v289_v47, 7  ;;  %v3299_v47 = vld [vmem:[#allocation4 + $0x60] sm:$0xff]  }
 0x100   :  { %2262 = vmatprep.subr.bf16.mxu1 %v3250_v56  ;;  %v287_v56 = vld [vmem:[%s3677_s2] sm:$0xf] }
 0x102   :  { %2220 = vmatpush1.bf16.msra.mxu0 %v3200_v52 }
 0x103   :  { %2221 = vmatprep.subr.bf16.mxu0 %v3205_v53  ;;  %2263 = vmatpush1.bf16.msra.mxu1 %v3248_v59 }
 0x104   :  { %2264 = vmatprep.subr.bf16.mxu1 %v3253_v49 }
 0x106   :  { %2222 = vmatpush1.bf16.msra.mxu0 %v3203_v54  ;;  %v295_v54 = vsub.s32 1, %v3649_v50 }
 0x107   :  { %2223 = vmatprep.subr.bf16.mxu0 %v3208_v41  ;;  %2265 = vmatpush1.bf16.msra.mxu1 %v3251_v61  ;;  %v291_v41 = vsub.s32 0, %v3649_v50 }
 0x108   :  { %2266 = vmatprep.subr.bf16.mxu1 %v3256_v62 }
 0x10a   :  { %2224 = vmatpush1.bf16.msra.mxu0 %v3206_v57  ;;  %v296_v57 = vrot.slane %v287_v56, %v295_v54 }
 0x10b   :  { %2225 = vmatprep.subr.bf16.mxu0 %v3211_v58  ;;  %2267 = vmatpush1.bf16.msra.mxu1 %v3254_v1  ;;  %v292_v58 = vrot.slane %v287_v56, %v291_v41 }
 0x10c   :  { %2268 = vmatprep.subr.bf16.mxu1 %v3259_v8 }
 0x10e   :  { %2226 = vmatpush1.bf16.msra.mxu0 %v3209_v4 }
 0x10f   :  { %2227 = vmatprep.subr.bf16.mxu0 %v3214_v60  ;;  %2269 = vmatpush1.bf16.msra.mxu1 %v3257_v9 }
 0x110   :  { %2270 = vmatprep.subr.bf16.mxu1 %v3262_v13 }
 0x112   :  { %2228 = vmatpush1.bf16.msra.mxu0 %v3212_v63 }
 0x113   :  { %2229 = vmatprep.subr.bf16.mxu0 %v3217_v0  ;;  %2271 = vmatpush1.bf16.msra.mxu1 %v3260_v15 }
 0x114   :  { %2272 = vmatprep.subr.bf16.mxu1 %v3265_v18 }
 0x116   :  { %2230 = vmatpush1.bf16.msra.mxu0 %v3215_v35 }
 0x117   :  { %2231 = vmatprep.subr.bf16.mxu0 %v3220_v2  ;;  %2273 = vmatpush1.bf16.msra.mxu1 %v3263_v19 }
 0x118   :  { %2274 = vmatprep.subr.bf16.mxu1 %v3268_v20 }
 0x11a   :  { %2232 = vmatpush1.bf16.msra.mxu0 %v3218_v3 }
 0x11b   :  { %2233 = vmatprep.subr.bf16.mxu0 %v3223_v5  ;;  %2275 = vmatpush1.bf16.msra.mxu1 %v3266_v22 }
 0x11c   :  { %2276 = vmatprep.subr.bf16.mxu1 %v3271_v24 }
 0x11d   :  { %v1499_v52 = vpop.f32.mrf.mxu0 }
 0x11e   :  { %2234 = vmatpush2.bf16.msra.mxu0 %v3221_v6  ;;  %v1542_v48 = vpop.f32.mrf.mxu1  ;;  %v1500_v61 = vadd.f32 %v1499_v52, %v292_v58 }
 0x11f   :  { %2235 = vmatprep.subr.bf16.mxu0 %v3226_v7  ;;  %2277 = vmatpush2.bf16.msra.mxu1 %v3269_v26  ;;  %v1501_v11 = vpop.f32.mrf.mxu0 }
 0x120   :  { %2278 = vmatprep.subr.bf16.mxu1 %v3274_v28  ;;  %v1544_v53 = vpop.f32.mrf.mxu1  ;;  %v1502_v60 = vadd.f32 %v1501_v11, %v296_v57  ;;  %v1543_v3 = vadd.f32 %v1542_v48, %v1500_v61  ;;  %v3301_v61 = vld [vmem:[#allocation4 + $0x58] sm:$0xff]  }
 0x121   :  { %v1503_v59 = vpop.f32.mrf.mxu0 }
 0x122   :  { %2236 = vmatpush2.bf16.msra.mxu0 %v3224_v10  ;;  %v1546_v55 = vpop.f32.mrf.mxu1  ;;  %v1504_v63 = vadd.f32 %v1503_v59, %v292_v58  ;;  %v1545_v35 = vadd.f32 %v1544_v53, %v1502_v60 }
 0x123   :  { %2237 = vmatprep.subr.bf16.mxu0 %v3229_v12  ;;  %2279 = vmatpush2.bf16.msra.mxu1 %v3272_v51  ;;  %v1505_v62 = vpop.f32.mrf.mxu0 }
 0x124   :  { %2280 = vmatprep.subr.bf16.mxu1 %v3277_v31  ;;  %v1548_v49 = vpop.f32.mrf.mxu1  ;;  %v1506_v2 = vadd.f32 %v1505_v62, %v296_v57  ;;  %v1547_v6 = vadd.f32 %v1546_v55, %v1504_v63  ;;  %v303_v31 = vsub.s32 3, %v3649_v50 }
 0x126   :  { %2238 = vmatpush2.bf16.msra.mxu0 %v3227_v16  ;;  %v1549_v12 = vadd.f32 %v1548_v49, %v1506_v2  ;;  %v3300_v49 = vld [vmem:[#allocation4 + $0x20] sm:$0xff]  }
 0x127   :  { %2239 = vmatprep.subr.bf16.mxu0 %v3232_v17  ;;  %2281 = vmatpush2.bf16.msra.mxu1 %v3275_v14  ;;  %v3294_v14 = vld [vmem:[#allocation4 + $0x38] sm:$0xff]  }
 0x128   :  { %2282 = vmatprep.subr.bf16.mxu1 %v3280_v34  ;;  %v299_v34 = vsub.s32 2, %v3649_v50 }
 0x12a   :  { %2240 = vmatpush2.bf16.msra.mxu0 %v3230_v21 }
 0x12b   :  { %2241 = vmatprep.subr.bf16.mxu0 %v3235_v23  ;;  %2283 = vmatpush2.bf16.msra.mxu1 %v3278_v37 }
 0x12c   :  { %2284 = vmatprep.subr.bf16.mxu1 %v3283_v38  ;;  %v3296_v38 = vld [vmem:[#allocation4 + $0x30] sm:$0xff]  }
 0x12e   :  { %2242 = vmatpush2.bf16.msra.mxu0 %v3233_v25 }
 0x12f   :  { %2243 = vmatprep.subr.bf16.mxu0 %v3238_v27  ;;  %2285 = vmatpush2.bf16.msra.mxu1 %v3281_v39  ;;  %v304_v39 = vrot.slane %v287_v56, %v303_v31 }
 0x130   :  { %2286 = vmatprep.subr.bf16.mxu1 %v3286_v40  ;;  %v3297_v40 = vld [vmem:[#allocation4 + $0x68] sm:$0xff]  }
 0x132   :  { %2244 = vmatpush2.bf16.msra.mxu0 %v3236_v29 }
 0x133   :  { %2245 = vmatprep.subr.bf16.mxu0 %v3241_v30  ;;  %2287 = vmatpush2.bf16.msra.mxu1 %v3284_v42  ;;  %v300_v42 = vrot.slane %v287_v56, %v299_v34 }
 0x134   :  { %2288 = vmatprep.subr.bf16.mxu1 %v3289_v43 }
 0x136   :  { %2246 = vmatpush2.bf16.msra.mxu0 %v3239_v32  ;;  %v3293_v32 = vld [vmem:[#allocation4 + $0x78] sm:$0xff]  }
 0x137   :  { %2247 = vmatprep.subr.bf16.mxu0 %v3244_v33  ;;  %2289 = vmatpush2.bf16.msra.mxu1 %v3287_v44  ;;  %v3295_v33 = vld [vmem:[#allocation4 + $0x70] sm:$0xff]  }
 0x138   :  { %2290 = vmatprep.subr.bf16.mxu1 %v3292_v45  ;;  %v3298_v45 = vld [vmem:[#allocation4 + $0x28] sm:$0xff]  }
 0x13a   :  { %2248 = vmatpush2.bf16.msra.mxu0 %v3242_v36 }
 0x13b   :  { %2291 = vmatpush2.bf16.msra.mxu1 %v3290_v46  ;;  %2822 = vmatprep.subr.bf16.mxu0 %v3293_v32 }
 0x13e   :  { %v1628_v4 = vpop.f32.mrf.mxu1 }
 0x140   :  { %v1630_v0 = vpop.f32.mrf.mxu1 }
 0x142   :  { %v1632_v8 = vpop.f32.mrf.mxu1 }
 0x144   :  { %v1634_v19 = vpop.f32.mrf.mxu1 }
 0x15d   :  { %v1585_v1 = vpop.f32.mrf.mxu0 }
 0x15e   :  { %v1586_v9 = vadd.f32 %v1585_v1, %v1543_v3  ;;  %v3302_v3 = vld [vmem:[#allocation4 + $0x18] sm:$0xff]  }
 0x15f   :  { %v1587_v5 = vpop.f32.mrf.mxu0 }
 0x160   :  { %v1588_v7 = vadd.f32 %v1587_v5, %v1545_v35  ;;  %v1629_v20 = vadd.f32 %v1628_v4, %v1586_v9 }
 0x161   :  { %v1589_v10 = vpop.f32.mrf.mxu0 }
 0x162   :  { %v1590_v13 = vadd.f32 %v1589_v10, %v1547_v6  ;;  %v1631_v16 = vadd.f32 %v1630_v0, %v1588_v7  ;;  %v1809_v25 = vmax.f32 %v1629_v20, 0.0  ;;  %v3304_v20 = vld [vmem:[#allocation4 + $0x10] sm:$0xff]  }
 0x163   :  { %v1591_v15 = vpop.f32.mrf.mxu0 }
 0x164   :  { %v1633_v17 = vadd.f32 %v1632_v8, %v1590_v13  ;;  %v1592_v18 = vadd.f32 %v1591_v15, %v1549_v12  ;;  %v1810_v23 = vmax.f32 %v1631_v16, 0.0 }
 0x166   :  { %v1635_v21 = vadd.f32 %v1634_v19, %v1592_v18  ;;  %v1813_v22 = vmax.f32 %v1633_v17, 0.0  ;;  %v3303_v19 = vld [vmem:[#allocation4 + $0x50] sm:$0xff]  }
 0x168   :  { %v1814_v24 = vmax.f32 %v1635_v21, 0.0  ;;  %v1817_v27 = vpack.c.bf16 %v1813_v22, %v1809_v25  ;;  %v3305_v21 = vld [vmem:[#allocation4 + $0x48] sm:$0xff]  }
 0x169   :  { %v3306_v22 = vld [vmem:[#allocation4 + $0x8] sm:$0xff]  }
 0x16a   :  { %v1818_v26 = vpack.c.bf16 %v1814_v24, %v1810_v23  ;;  %v3307_v23 = vld [vmem:[#allocation4 + $0x40] sm:$0xff]  }
 0x16b   :  { %v3308_v24 = vld [vmem:[#allocation4] sm:$0xff]  }
 0x16c   :  { %2249 = vmatprep.mubr.bf16.mxu0 %v1818_v26 }
 0x16d   :  { %2250 = vmatmul.mubr.bf16.vlgmr.msra.gmra.mxu0 %v1817_v27  ;;  %v1885_v27 = vld [vmem:[%s3679_s4] sm:$0x3] }
 0x16e   :  { %2823 = vmatpush3.bf16.msra.mxu0 %v3294_v14 }
 0x16f   :  { %2824 = vmatprep.subr.bf16.mxu0 %v3295_v33 }
 0x172   :  { %2825 = vmatpush3.bf16.msra.mxu0 %v3296_v38 }
 0x173   :  { %2826 = vmatprep.subr.bf16.mxu0 %v3297_v40 }
 0x176   :  { %2827 = vmatpush3.bf16.msra.mxu0 %v3298_v45 }
 0x177   :  { %2828 = vmatprep.subr.bf16.mxu0 %v3299_v47 }
 0x17a   :  { %2829 = vmatpush3.bf16.msra.mxu0 %v3300_v49 }
 0x17b   :  { %2830 = vmatprep.subr.bf16.mxu0 %v3301_v61 }
 0x17e   :  { %v1671_v28 = vpop.f32.mrf.mxu1  ;;  %2831 = vmatpush3.bf16.msra.mxu0 %v3302_v3 }
 0x17f   :  { %v1672_v48 = vadd.f32 %v1671_v28, %v300_v42  ;;  %2832 = vmatprep.subr.bf16.mxu0 %v3303_v19 }
 0x180   :  { %v1673_v51 = vpop.f32.mrf.mxu1 }
 0x181   :  { %v1674_v46 = vadd.f32 %v1673_v51, %v304_v39  ;;  %v1890_v51 = vrot.slane %v1885_v27, %v291_v41 }
 0x182   :  { %v1675_v36 = vpop.f32.mrf.mxu1  ;;  %2833 = vmatpush3.bf16.msra.mxu0 %v3304_v20 }
 0x183   :  { %v1676_v11 = vadd.f32 %v1675_v36, %v300_v42  ;;  %2834 = vmatprep.subr.bf16.mxu0 %v3305_v21 }
 0x184   :  { %v1677_v43 = vpop.f32.mrf.mxu1 }
 0x185   :  { %v1678_v4 = vadd.f32 %v1677_v43, %v304_v39 }
 0x186   :  { %2835 = vmatpush3.bf16.msra.mxu0 %v3306_v22 }
 0x187   :  { %2836 = vmatprep.subr.bf16.mxu0 %v3307_v23 }
 0x18a   :  { %2837 = vmatpush3.bf16.msra.mxu0 %v3308_v24 }
 0x19d   :  { %v1714_v29 = vpop.f32.mrf.mxu0 }
 0x19e   :  { %v1715_v57 = vadd.f32 %v1714_v29, %v1672_v48  ;;  %v1894_v29 = vrot.slane %v1885_v27, %v295_v54 }
 0x19f   :  { %v1716_v30 = vpop.f32.mrf.mxu0 }
 0x1a0   :  { %v1717_v55 = vadd.f32 %v1716_v30, %v1674_v46 }
 0x1a1   :  { %v1718_v37 = vpop.f32.mrf.mxu0 }
 0x1a2   :  { %v1719_v60 = vadd.f32 %v1718_v37, %v1676_v11  ;;  %v2796_v11 = vld [vmem:[%s3681_s6] ss:$0 sm:$0xff] }
 0x1a3   :  { %v1720_v44 = vpop.f32.mrf.mxu0 }
 0x1a4   :  { %v1721_v1 = vadd.f32 %v1720_v44, %v1678_v4 }
 0x1bd   :  { %v1800_v53 = vpop.f32.mrf.mxu0 }
 0x1be   :  { %v1757_v52 = vpop.f32.mrf.mxu1 }
 0x1bf   :  { %v1802_v59 = vpop.f32.mrf.mxu0  ;;  %v1758_v62 = vadd.f32 %v1757_v52, %v1715_v57 }
 0x1c0   :  { %v1759_v58 = vpop.f32.mrf.mxu1 }
 0x1c1   :  { %v1760_v56 = vadd.f32 %v1759_v58, %v1717_v55  ;;  %v1804_v0 = vpop.f32.mrf.mxu0  ;;  %v1801_v8 = vadd.f32 %v1800_v53, %v1758_v62 }
 0x1c2   :  { %v1761_v63 = vpop.f32.mrf.mxu1 }
 0x1c3   :  { %v1762_v35 = vadd.f32 %v1761_v63, %v1719_v60  ;;  %v1803_v5 = vadd.f32 %v1802_v59, %v1760_v56  ;;  %v1806_v9 = vpop.f32.mrf.mxu0  ;;  %v1811_v16 = vmax.f32 %v1801_v8, 0.0 }
 0x1c4   :  { %v1763_v2 = vpop.f32.mrf.mxu1 }
 0x1c5   :  { %v1805_v6 = vadd.f32 %v1804_v0, %v1762_v35  ;;  %v1764_v7 = vadd.f32 %v1763_v2, %v1721_v1  ;;  %v1812_v13 = vmax.f32 %v1803_v5, 0.0 }
 0x1c7   :  { %v1807_v10 = vadd.f32 %v1806_v9, %v1764_v7  ;;  %v1815_v12 = vmax.f32 %v1805_v6, 0.0 }
 0x1c9   :  { %v1816_v15 = vmax.f32 %v1807_v10, 0.0  ;;  %v1819_v18 = vpack.c.bf16 %v1815_v12, %v1811_v16 }
 0x1cb   :  { %v1820_v17 = vpack.c.bf16 %v1816_v15, %v1812_v13 }
 0x1cd   :  { %2292 = vmatprep.mubr.bf16.mxu1 %v1820_v17 }
 0x1ce   :  { %2293 = vmatmul.mubr.bf16.vlgmr.msra.gmra.mxu1 %v1819_v18 }
 0x22d   :  { %v2251_v25 = vpop.f32.mrf.mxu0 }
 0x22e   :  { %v2252_v34 = vadd.f32 %v2251_v25, %v1890_v51 }
 0x22f   :  { %v2253_v26 = vpop.f32.mrf.mxu0 }
 0x230   :  { %v2254_v14 = vadd.f32 %v2253_v26, %v1894_v29 }
 0x231   :  { %v2255_v28 = vpop.f32.mrf.mxu0 }
 0x232   :  { %v2256_v33 = vadd.f32 %v2255_v28, %v1890_v51 }
 0x233   :  { %v2257_v31 = vpop.f32.mrf.mxu0 }
 0x234   :  { %v2258_v37 = vadd.f32 %v2257_v31, %v1894_v29 }
 0x28e   :  { %v2294_v30 = vpop.f32.mrf.mxu1 }
 0x28f   :  { %v2295_v40 = vadd.f32 %v2294_v30, %v2252_v34 }
 0x290   :  { %v2296_v32 = vpop.f32.mrf.mxu1 }
 0x291   :  { %v2297_v38 = vadd.f32 %v2296_v32, %v2254_v14  ;;  %v2303_v54 = vmax.f32 %v2295_v40, 0.0 }
 0x292   :  { %v2298_v36 = vpop.f32.mrf.mxu1 }
 0x293   :  { %v2299_v39 = vadd.f32 %v2298_v36, %v2256_v33  ;;  %v2304_v45 = vmax.f32 %v2297_v38, 0.0 }
 0x294   :  { %v2300_v42 = vpop.f32.mrf.mxu1 }
 0x295   :  { %v2301_v43 = vadd.f32 %v2300_v42, %v2258_v37  ;;  %v2305_v44 = vmax.f32 %v2299_v39, 0.0 }
 0x297   :  { %v2306_v46 = vmax.f32 %v2301_v43, 0.0  ;;  %v2307_v50 = vpack.c.bf16 %v2305_v44, %v2303_v54 }
 0x299   :  { %v2308_v47 = vpack.c.bf16 %v2306_v46, %v2304_v45 }
 0x29b   :  { %2476 = vmatprep.mubr.bf16.mxu0 %v2308_v47 }
 0x29c   :  { %2477 = vmatmul.mubr.bf16.vlgmr.msra.gmra.mxu0 %v2307_v50 }
 0x35c   :  { %v2838_v41 = vpop.f32.mrf.mxu0 }
 0x35e   :  { %v2839_v48 = vpop.f32.mrf.mxu0 }
 0x35f   :  { %v2840_v53 = vadd.f32 %v2839_v48, %v2838_v41 }
 0x360   :  { %v2841_v52 = vpop.f32.mrf.mxu0 }
 0x361   :  { %v2479_v58 = vadd.f32 %v2840_v53, %v2796_v11 }
 0x362   :  { %v2842_v55 = vpop.f32.mrf.mxu0 }
 0x363   :  { %v2843_v57 = vadd.f32 %v2842_v55, %v2841_v52 }
 0x365   :  { %v2482_v59 = vadd.f32 %v2843_v57, %v2796_v11 }
 0x367   :  { %v2820_v49 = vpack.c.bf16 %v2482_v59, %v2479_v58 }
 0x369   :  { %2821 = vst [vmem:[%s3682_s7] sm:$0xff] %v2820_v49  }
 0x36a   :  { %2499 = vsyncpa [#allocation3], 1 }
 0x36b   :  { %2500 = vsyncpa [#allocation5], 1 }

</bundles_post_ra>
